<compile_context>
chip_gen: v5e
topology: v5e:2x2
jax: 0.10.0
libtpu: 0.0.40
codegen_flags: <defaults>
</compile_context>

<pallas_src>
import functools

import jax
import jax.numpy as jnp
from jax.experimental import pallas as pl
from jax.experimental.pallas import tpu as pltpu


def _tlayer_kernel(x_ref, w_ref, o_ref, patch_ref, *, c_pad, kk, k, n_p, l_valid):
    # x_ref    : (3, Np*Np)      flattened zero-padded input image (one batch elem)
    # w_ref    : (6*C_pad, Kp)   fused block-diag [W0 per channel ; W1 per channel]
    # o_ref    : (C_pad, L_pad)  lane-dense conv output in padded-width pixel order
    # patch_ref: (Kp, L_pad)     VMEM scratch: in-kernel im2col patch matrix
    kp, l_pad = patch_ref.shape

    # Zero the contraction-dim padding rows (never written below) so stale VMEM
    # (possibly inf/nan) cannot leak through the zero weight columns as 0*inf.
    # Stale data in columns >= l_valid only affects output columns the wrapper
    # discards, so it does not need zeroing.
    pad_rows = kp - 3 * kk
    if pad_rows > 0:
        patch_ref[3 * kk:, :] = jnp.zeros((pad_rows, l_pad), patch_ref.dtype)

    # In-kernel im2col ("padded-width" trick): every patch row is a static
    # lane-shifted slice of the flat padded image already resident in VMEM.
    for c in range(3):
        for ky in range(k):
            for kx in range(k):
                row = c * kk + ky * k + kx
                off = ky * n_p + kx
                patch_ref[row:row + 1, 0:l_valid] = x_ref[c:c + 1, off:off + l_valid]

    # One fused block-diagonal MXU matmul: rows [0, 3*C_pad) are the W0 convs
    # per channel, rows [3*C_pad, 6*C_pad) the W1 convs per channel.
    y = jnp.dot(w_ref[...], patch_ref[...], preferred_element_type=jnp.float32)
    n = 3 * c_pad
    prod = y[:n, :] * y[n:2 * n, :]                       # per-channel W0*W1 (VPU)
    acc = (prod[0:c_pad, :] + prod[c_pad:2 * c_pad, :]
           + prod[2 * c_pad:3 * c_pad, :])                # channel sum (VPU)
    o_ref[...] = acc.astype(o_ref.dtype)


def tlayer_forward(x, w0, w1, padding=2):
    """x: (B, 3, N, N); w0, w1: (C_out, 1, K, K) (PyTorch Conv2d OIHW, no bias)."""
    B, Cin, N, _ = x.shape
    assert Cin == 3, "TLayer expects 3 input channels"
    C_out, _, K, _ = w0.shape
    Np = N + 2 * padding                      # padded spatial size
    No = Np - K + 1                           # output spatial size
    KK = K * K
    Kp = ((3 * KK + 7) // 8) * 8              # contraction dim, sublane multiple
    C_pad = ((C_out + 7) // 8) * 8            # sublane-aligned output channels
    L = (No - 1) * Np + No                    # valid pixel columns (padded-width order)
    L_pad = ((No * Np + 127) // 128) * 128    # lane-dense output width (>= No*Np > L)

    # --- glue: spatial zero-pad + flatten (single ~1.5x copy of the input) ---
    xp = jnp.pad(x, ((0, 0), (0, 0), (padding, padding), (padding, padding)))
    x_flat = xp.reshape(B, 3, Np * Np)

    # Fused block-diagonal weight: rows [0, 3*C_pad) = W0 per channel,
    # rows [3*C_pad, 6*C_pad) = W1 per channel; zero rows/cols pad to tiles.
    w0_mat = w0.reshape(C_out, KK).astype(x.dtype)
    w1_mat = w1.reshape(C_out, KK).astype(x.dtype)
    w_big = jnp.zeros((6 * C_pad, Kp), x.dtype)
    for c in range(3):
        w_big = w_big.at[c * C_pad:c * C_pad + C_out,
                         c * KK:(c + 1) * KK].set(w0_mat)
        w_big = w_big.at[3 * C_pad + c * C_pad:3 * C_pad + c * C_pad + C_out,
                         c * KK:(c + 1) * KK].set(w1_mat)

    # VMEM budget: double-buffered image/output blocks + resident weight +
    # patch scratch + in-kernel f32 temporaries (y, prod, acc) + headroom.
    itemsize = jnp.dtype(x.dtype).itemsize
    vmem_bytes = (2 * (3 * Np * Np + C_pad * L_pad + 6 * C_pad * Kp) * itemsize
                  + Kp * L_pad * itemsize
                  + 10 * C_pad * L_pad * 4
                  + (2 << 20))
    vmem_bytes = int(min(max(vmem_bytes, 8 << 20), 48 << 20))   # v7x-safe ceiling

    kernel = functools.partial(_tlayer_kernel, c_pad=C_pad, kk=KK, k=K,
                               n_p=Np, l_valid=L)

    # --- hot path: per image, DMA the raw padded pixels once, build the patch
    # matrix in VMEM, one fused MXU matmul + VPU product/sum, lane-dense store.
    out_flat = pl.pallas_call(
        kernel,
        out_shape=jax.ShapeDtypeStruct((B, C_pad, L_pad), x.dtype),
        grid_spec=pltpu.PrefetchScalarGridSpec(
            num_scalar_prefetch=0,
            grid=(B,),
            in_specs=[
                pl.BlockSpec((None, 3, Np * Np), lambda b: (b, 0, 0)),
                pl.BlockSpec((6 * C_pad, Kp), lambda b: (0, 0)),   # weight resident
            ],
            out_specs=pl.BlockSpec((None, C_pad, L_pad), lambda b: (b, 0, 0)),
            scratch_shapes=[pltpu.VMEM((Kp, L_pad), x.dtype)],
        ),
        compiler_params=pltpu.CompilerParams(
            dimension_semantics=("parallel",),
            vmem_limit_bytes=vmem_bytes),
    )(x_flat, w_big)

    # Cheap column extraction: padded-width pixel order -> NCHW (no transpose).
    out = out_flat[:, :C_out, :No * Np].reshape(B, C_out, No, Np)[..., :No]
    return out


def tlayer_reference(x, w0, w1, padding=2):
    """Pure-JAX reference mirroring the PyTorch forward (cross-correlation)."""
    def conv(ch, w):
        return jax.lax.conv_general_dilated(
            ch, w, window_strides=(1, 1),
            padding=[(padding, padding), (padding, padding)],
            dimension_numbers=("NCHW", "OIHW", "NCHW"))
    acc = 0.0
    for c in range(3):
        ch = x[:, c:c + 1]
        acc = acc + conv(ch, w0) * conv(ch, w1)
    return acc


if __name__ == "__main__":
    B, N = 2, 16
    out_channels, kernel_size, padding = 8, 5, 2

    key = jax.random.PRNGKey(0)
    kx, k0, k1 = jax.random.split(key, 3)
    x = jax.random.normal(kx, (B, 3, N, N), dtype=jnp.float32)
    # deterministic Conv2d weights, shape (out_channels, 1, K, K), no bias
    w0 = jax.random.normal(k0, (out_channels, 1, kernel_size, kernel_size),
                           dtype=jnp.float32) * 0.1
    w1 = jax.random.normal(k1, (out_channels, 1, kernel_size, kernel_size),
                           dtype=jnp.float32) * 0.1

    y = tlayer_forward(x, w0, w1, padding=padding)
    y = jax.block_until_ready(y)

    y_ref = tlayer_reference(x, w0, w1, padding=padding)
    assert y.shape == (B, out_channels, N, N), y.shape
    assert jnp.allclose(y, y_ref, atol=1e-4, rtol=1e-4), \
        float(jnp.max(jnp.abs(y - y_ref)))

    print("KERNEL_OK")
</pallas_src>

<mosaic_0001>
module attributes {stable_mosaic.version = 11 : i64} {
  func.func @_tlayer_kernel(%arg0: i32, %arg1: memref<1x3x400xf32, #tpu.memory_space<vmem>>, %arg2: memref<48x80xf32, #tpu.memory_space<vmem>>, %arg3: memref<1x8x384xf32, #tpu.memory_space<vmem>>, %arg4: memref<80x384xf32, #tpu.memory_space<vmem>>) attributes {dimension_semantics = [#tpu.dimension_semantics<parallel>], iteration_bounds = array<i64: 2>, scalar_prefetch = 0 : i64, scratch_operands = 1 : i64, tpu.core_type = #tpu.core_type<tc>, window_params = [{transform_indices = @transform_0, window_bounds = array<i64: 1, 3, 400>}, {pipeline_mode = #tpu.pipeline_mode<synchronous>, transform_indices = @transform_1, window_bounds = array<i64: 48, 80>}, {transform_indices = @transform_2, window_bounds = array<i64: 1, 8, 384>}]} {
    %cst = arith.constant 0.000000e+00 : f32
    %0 = vector.broadcast %cst : f32 to vector<5x384xf32>
    %c75 = arith.constant 75 : index
    %c0 = arith.constant 0 : index
    %1 = vector.load %arg4[%c75, %c0] : memref<80x384xf32, #tpu.memory_space<vmem>>, vector<5x384xf32>
    tpu.vector_store %arg4[%c75, %c0], %0 {strides = array<i32>} : memref<80x384xf32, #tpu.memory_space<vmem>>, vector<5x384xf32>,
    %c0_0 = arith.constant 0 : index
    %c0_1 = arith.constant 0 : index
    %c0_2 = arith.constant 0 : index
    %2 = vector.load %arg1[%c0_0, %c0_1, %c0_2] : memref<1x3x400xf32, #tpu.memory_space<vmem>>, vector<1x1x316xf32>
    %3 = vector.shape_cast %2 : vector<1x1x316xf32> to vector<1x316xf32>
    %c0_3 = arith.constant 0 : index
    %c0_4 = arith.constant 0 : index
    %4 = vector.load %arg4[%c0_3, %c0_4] : memref<80x384xf32, #tpu.memory_space<vmem>>, vector<1x316xf32>
    tpu.vector_store %arg4[%c0_3, %c0_4], %3 {strides = array<i32>} : memref<80x384xf32, #tpu.memory_space<vmem>>, vector<1x316xf32>,
    %c0_5 = arith.constant 0 : index
    %c0_6 = arith.constant 0 : index
    %c1 = arith.constant 1 : index
    %5 = vector.load %arg1[%c0_5, %c0_6, %c1] : memref<1x3x400xf32, #tpu.memory_space<vmem>>, vector<1x1x316xf32>
    %6 = vector.shape_cast %5 : vector<1x1x316xf32> to vector<1x316xf32>
    %c1_7 = arith.constant 1 : index
    %c0_8 = arith.constant 0 : index
    %7 = vector.load %arg4[%c1_7, %c0_8] : memref<80x384xf32, #tpu.memory_space<vmem>>, vector<1x316xf32>
    tpu.vector_store %arg4[%c1_7, %c0_8], %6 {strides = array<i32>} : memref<80x384xf32, #tpu.memory_space<vmem>>, vector<1x316xf32>,
    %c0_9 = arith.constant 0 : index
    %c0_10 = arith.constant 0 : index
    %c2 = arith.constant 2 : index
    %8 = vector.load %arg1[%c0_9, %c0_10, %c2] : memref<1x3x400xf32, #tpu.memory_space<vmem>>, vector<1x1x316xf32>
    %9 = vector.shape_cast %8 : vector<1x1x316xf32> to vector<1x316xf32>
    %c2_11 = arith.constant 2 : index
    %c0_12 = arith.constant 0 : index
    %10 = vector.load %arg4[%c2_11, %c0_12] : memref<80x384xf32, #tpu.memory_space<vmem>>, vector<1x316xf32>
    tpu.vector_store %arg4[%c2_11, %c0_12], %9 {strides = array<i32>} : memref<80x384xf32, #tpu.memory_space<vmem>>, vector<1x316xf32>,
    %c0_13 = arith.constant 0 : index
    %c0_14 = arith.constant 0 : index
    %c3 = arith.constant 3 : index
    %11 = vector.load %arg1[%c0_13, %c0_14, %c3] : memref<1x3x400xf32, #tpu.memory_space<vmem>>, vector<1x1x316xf32>
    %12 = vector.shape_cast %11 : vector<1x1x316xf32> to vector<1x316xf32>
    %c3_15 = arith.constant 3 : index
    %c0_16 = arith.constant 0 : index
    %13 = vector.load %arg4[%c3_15, %c0_16] : memref<80x384xf32, #tpu.memory_space<vmem>>, vector<1x316xf32>
    tpu.vector_store %arg4[%c3_15, %c0_16], %12 {strides = array<i32>} : memref<80x384xf32, #tpu.memory_space<vmem>>, vector<1x316xf32>,
    %c0_17 = arith.constant 0 : index
    %c0_18 = arith.constant 0 : index
    %c4 = arith.constant 4 : index
    %14 = vector.load %arg1[%c0_17, %c0_18, %c4] : memref<1x3x400xf32, #tpu.memory_space<vmem>>, vector<1x1x316xf32>
    %15 = vector.shape_cast %14 : vector<1x1x316xf32> to vector<1x316xf32>
    %c4_19 = arith.constant 4 : index
    %c0_20 = arith.constant 0 : index
    %16 = vector.load %arg4[%c4_19, %c0_20] : memref<80x384xf32, #tpu.memory_space<vmem>>, vector<1x316xf32>
    tpu.vector_store %arg4[%c4_19, %c0_20], %15 {strides = array<i32>} : memref<80x384xf32, #tpu.memory_space<vmem>>, vector<1x316xf32>,
    %c0_21 = arith.constant 0 : index
    %c0_22 = arith.constant 0 : index
    %c20 = arith.constant 20 : index
    %17 = vector.load %arg1[%c0_21, %c0_22, %c20] : memref<1x3x400xf32, #tpu.memory_space<vmem>>, vector<1x1x316xf32>
    %18 = vector.shape_cast %17 : vector<1x1x316xf32> to vector<1x316xf32>
    %c5 = arith.constant 5 : index
    %c0_23 = arith.constant 0 : index
    %19 = vector.load %arg4[%c5, %c0_23] : memref<80x384xf32, #tpu.memory_space<vmem>>, vector<1x316xf32>
    tpu.vector_store %arg4[%c5, %c0_23], %18 {strides = array<i32>} : memref<80x384xf32, #tpu.memory_space<vmem>>, vector<1x316xf32>,
    %c0_24 = arith.constant 0 : index
    %c0_25 = arith.constant 0 : index
    %c21 = arith.constant 21 : index
    %20 = vector.load %arg1[%c0_24, %c0_25, %c21] : memref<1x3x400xf32, #tpu.memory_space<vmem>>, vector<1x1x316xf32>
    %21 = vector.shape_cast %20 : vector<1x1x316xf32> to vector<1x316xf32>
    %c6 = arith.constant 6 : index
    %c0_26 = arith.constant 0 : index
    %22 = vector.load %arg4[%c6, %c0_26] : memref<80x384xf32, #tpu.memory_space<vmem>>, vector<1x316xf32>
    tpu.vector_store %arg4[%c6, %c0_26], %21 {strides = array<i32>} : memref<80x384xf32, #tpu.memory_space<vmem>>, vector<1x316xf32>,
    %c0_27 = arith.constant 0 : index
    %c0_28 = arith.constant 0 : index
    %c22 = arith.constant 22 : index
    %23 = vector.load %arg1[%c0_27, %c0_28, %c22] : memref<1x3x400xf32, #tpu.memory_space<vmem>>, vector<1x1x316xf32>
    %24 = vector.shape_cast %23 : vector<1x1x316xf32> to vector<1x316xf32>
    %c7 = arith.constant 7 : index
    %c0_29 = arith.constant 0 : index
    %25 = vector.load %arg4[%c7, %c0_29] : memref<80x384xf32, #tpu.memory_space<vmem>>, vector<1x316xf32>
    tpu.vector_store %arg4[%c7, %c0_29], %24 {strides = array<i32>} : memref<80x384xf32, #tpu.memory_space<vmem>>, vector<1x316xf32>,
    %c0_30 = arith.constant 0 : index
    %c0_31 = arith.constant 0 : index
    %c23 = arith.constant 23 : index
    %26 = vector.load %arg1[%c0_30, %c0_31, %c23] : memref<1x3x400xf32, #tpu.memory_space<vmem>>, vector<1x1x316xf32>
    %27 = vector.shape_cast %26 : vector<1x1x316xf32> to vector<1x316xf32>
    %c8 = arith.constant 8 : index
    %c0_32 = arith.constant 0 : index
    %28 = vector.load %arg4[%c8, %c0_32] : memref<80x384xf32, #tpu.memory_space<vmem>>, vector<1x316xf32>
    tpu.vector_store %arg4[%c8, %c0_32], %27 {strides = array<i32>} : memref<80x384xf32, #tpu.memory_space<vmem>>, vector<1x316xf32>,
    %c0_33 = arith.constant 0 : index
    %c0_34 = arith.constant 0 : index
    %c24 = arith.constant 24 : index
    %29 = vector.load %arg1[%c0_33, %c0_34, %c24] : memref<1x3x400xf32, #tpu.memory_space<vmem>>, vector<1x1x316xf32>
    %30 = vector.shape_cast %29 : vector<1x1x316xf32> to vector<1x316xf32>
    %c9 = arith.constant 9 : index
    %c0_35 = arith.constant 0 : index
    %31 = vector.load %arg4[%c9, %c0_35] : memref<80x384xf32, #tpu.memory_space<vmem>>, vector<1x316xf32>
    tpu.vector_store %arg4[%c9, %c0_35], %30 {strides = array<i32>} : memref<80x384xf32, #tpu.memory_space<vmem>>, vector<1x316xf32>,
    %c0_36 = arith.constant 0 : index
    %c0_37 = arith.constant 0 : index
    %c40 = arith.constant 40 : index
    %32 = vector.load %arg1[%c0_36, %c0_37, %c40] : memref<1x3x400xf32, #tpu.memory_space<vmem>>, vector<1x1x316xf32>
    %33 = vector.shape_cast %32 : vector<1x1x316xf32> to vector<1x316xf32>
    %c10 = arith.constant 10 : index
    %c0_38 = arith.constant 0 : index
    %34 = vector.load %arg4[%c10, %c0_38] : memref<80x384xf32, #tpu.memory_space<vmem>>, vector<1x316xf32>
    tpu.vector_store %arg4[%c10, %c0_38], %33 {strides = array<i32>} : memref<80x384xf32, #tpu.memory_space<vmem>>, vector<1x316xf32>,
    %c0_39 = arith.constant 0 : index
    %c0_40 = arith.constant 0 : index
    %c41 = arith.constant 41 : index
    %35 = vector.load %arg1[%c0_39, %c0_40, %c41] : memref<1x3x400xf32, #tpu.memory_space<vmem>>, vector<1x1x316xf32>
    %36 = vector.shape_cast %35 : vector<1x1x316xf32> to vector<1x316xf32>
    %c11 = arith.constant 11 : index
    %c0_41 = arith.constant 0 : index
    %37 = vector.load %arg4[%c11, %c0_41] : memref<80x384xf32, #tpu.memory_space<vmem>>, vector<1x316xf32>
    tpu.vector_store %arg4[%c11, %c0_41], %36 {strides = array<i32>} : memref<80x384xf32, #tpu.memory_space<vmem>>, vector<1x316xf32>,
    %c0_42 = arith.constant 0 : index
    %c0_43 = arith.constant 0 : index
    %c42 = arith.constant 42 : index
    %38 = vector.load %arg1[%c0_42, %c0_43, %c42] : memref<1x3x400xf32, #tpu.memory_space<vmem>>, vector<1x1x316xf32>
    %39 = vector.shape_cast %38 : vector<1x1x316xf32> to vector<1x316xf32>
    %c12 = arith.constant 12 : index
    %c0_44 = arith.constant 0 : index
    %40 = vector.load %arg4[%c12, %c0_44] : memref<80x384xf32, #tpu.memory_space<vmem>>, vector<1x316xf32>
    tpu.vector_store %arg4[%c12, %c0_44], %39 {strides = array<i32>} : memref<80x384xf32, #tpu.memory_space<vmem>>, vector<1x316xf32>,
    %c0_45 = arith.constant 0 : index
    %c0_46 = arith.constant 0 : index
    %c43 = arith.constant 43 : index
    %41 = vector.load %arg1[%c0_45, %c0_46, %c43] : memref<1x3x400xf32, #tpu.memory_space<vmem>>, vector<1x1x316xf32>
    %42 = vector.shape_cast %41 : vector<1x1x316xf32> to vector<1x316xf32>
    %c13 = arith.constant 13 : index
    %c0_47 = arith.constant 0 : index
    %43 = vector.load %arg4[%c13, %c0_47] : memref<80x384xf32, #tpu.memory_space<vmem>>, vector<1x316xf32>
    tpu.vector_store %arg4[%c13, %c0_47], %42 {strides = array<i32>} : memref<80x384xf32, #tpu.memory_space<vmem>>, vector<1x316xf32>,
    %c0_48 = arith.constant 0 : index
    %c0_49 = arith.constant 0 : index
    %c44 = arith.constant 44 : index
    %44 = vector.load %arg1[%c0_48, %c0_49, %c44] : memref<1x3x400xf32, #tpu.memory_space<vmem>>, vector<1x1x316xf32>
    %45 = vector.shape_cast %44 : vector<1x1x316xf32> to vector<1x316xf32>
    %c14 = arith.constant 14 : index
    %c0_50 = arith.constant 0 : index
    %46 = vector.load %arg4[%c14, %c0_50] : memref<80x384xf32, #tpu.memory_space<vmem>>, vector<1x316xf32>
    tpu.vector_store %arg4[%c14, %c0_50], %45 {strides = array<i32>} : memref<80x384xf32, #tpu.memory_space<vmem>>, vector<1x316xf32>,
    %c0_51 = arith.constant 0 : index
    %c0_52 = arith.constant 0 : index
    %c60 = arith.constant 60 : index
    %47 = vector.load %arg1[%c0_51, %c0_52, %c60] : memref<1x3x400xf32, #tpu.memory_space<vmem>>, vector<1x1x316xf32>
    %48 = vector.shape_cast %47 : vector<1x1x316xf32> to vector<1x316xf32>
    %c15 = arith.constant 15 : index
    %c0_53 = arith.constant 0 : index
    %49 = vector.load %arg4[%c15, %c0_53] : memref<80x384xf32, #tpu.memory_space<vmem>>, vector<1x316xf32>
    tpu.vector_store %arg4[%c15, %c0_53], %48 {strides = array<i32>} : memref<80x384xf32, #tpu.memory_space<vmem>>, vector<1x316xf32>,
    %c0_54 = arith.constant 0 : index
    %c0_55 = arith.constant 0 : index
    %c61 = arith.constant 61 : index
    %50 = vector.load %arg1[%c0_54, %c0_55, %c61] : memref<1x3x400xf32, #tpu.memory_space<vmem>>, vector<1x1x316xf32>
    %51 = vector.shape_cast %50 : vector<1x1x316xf32> to vector<1x316xf32>
    %c16 = arith.constant 16 : index
    %c0_56 = arith.constant 0 : index
    %52 = vector.load %arg4[%c16, %c0_56] : memref<80x384xf32, #tpu.memory_space<vmem>>, vector<1x316xf32>
    tpu.vector_store %arg4[%c16, %c0_56], %51 {strides = array<i32>} : memref<80x384xf32, #tpu.memory_space<vmem>>, vector<1x316xf32>,
    %c0_57 = arith.constant 0 : index
    %c0_58 = arith.constant 0 : index
    %c62 = arith.constant 62 : index
    %53 = vector.load %arg1[%c0_57, %c0_58, %c62] : memref<1x3x400xf32, #tpu.memory_space<vmem>>, vector<1x1x316xf32>
    %54 = vector.shape_cast %53 : vector<1x1x316xf32> to vector<1x316xf32>
    %c17 = arith.constant 17 : index
    %c0_59 = arith.constant 0 : index
    %55 = vector.load %arg4[%c17, %c0_59] : memref<80x384xf32, #tpu.memory_space<vmem>>, vector<1x316xf32>
    tpu.vector_store %arg4[%c17, %c0_59], %54 {strides = array<i32>} : memref<80x384xf32, #tpu.memory_space<vmem>>, vector<1x316xf32>,
    %c0_60 = arith.constant 0 : index
    %c0_61 = arith.constant 0 : index
    %c63 = arith.constant 63 : index
    %56 = vector.load %arg1[%c0_60, %c0_61, %c63] : memref<1x3x400xf32, #tpu.memory_space<vmem>>, vector<1x1x316xf32>
    %57 = vector.shape_cast %56 : vector<1x1x316xf32> to vector<1x316xf32>
    %c18 = arith.constant 18 : index
    %c0_62 = arith.constant 0 : index
    %58 = vector.load %arg4[%c18, %c0_62] : memref<80x384xf32, #tpu.memory_space<vmem>>, vector<1x316xf32>
    tpu.vector_store %arg4[%c18, %c0_62], %57 {strides = array<i32>} : memref<80x384xf32, #tpu.memory_space<vmem>>, vector<1x316xf32>,
    %c0_63 = arith.constant 0 : index
    %c0_64 = arith.constant 0 : index
    %c64 = arith.constant 64 : index
    %59 = vector.load %arg1[%c0_63, %c0_64, %c64] : memref<1x3x400xf32, #tpu.memory_space<vmem>>, vector<1x1x316xf32>
    %60 = vector.shape_cast %59 : vector<1x1x316xf32> to vector<1x316xf32>
    %c19 = arith.constant 19 : index
    %c0_65 = arith.constant 0 : index
    %61 = vector.load %arg4[%c19, %c0_65] : memref<80x384xf32, #tpu.memory_space<vmem>>, vector<1x316xf32>
    tpu.vector_store %arg4[%c19, %c0_65], %60 {strides = array<i32>} : memref<80x384xf32, #tpu.memory_space<vmem>>, vector<1x316xf32>,
    %c0_66 = arith.constant 0 : index
    %c0_67 = arith.constant 0 : index
    %c80 = arith.constant 80 : index
    %62 = vector.load %arg1[%c0_66, %c0_67, %c80] : memref<1x3x400xf32, #tpu.memory_space<vmem>>, vector<1x1x316xf32>
    %63 = vector.shape_cast %62 : vector<1x1x316xf32> to vector<1x316xf32>
    %c20_68 = arith.constant 20 : index
    %c0_69 = arith.constant 0 : index
    %64 = vector.load %arg4[%c20_68, %c0_69] : memref<80x384xf32, #tpu.memory_space<vmem>>, vector<1x316xf32>
    tpu.vector_store %arg4[%c20_68, %c0_69], %63 {strides = array<i32>} : memref<80x384xf32, #tpu.memory_space<vmem>>, vector<1x316xf32>,
    %c0_70 = arith.constant 0 : index
    %c0_71 = arith.constant 0 : index
    %c81 = arith.constant 81 : index
    %65 = vector.load %arg1[%c0_70, %c0_71, %c81] : memref<1x3x400xf32, #tpu.memory_space<vmem>>, vector<1x1x316xf32>
    %66 = vector.shape_cast %65 : vector<1x1x316xf32> to vector<1x316xf32>
    %c21_72 = arith.constant 21 : index
    %c0_73 = arith.constant 0 : index
    %67 = vector.load %arg4[%c21_72, %c0_73] : memref<80x384xf32, #tpu.memory_space<vmem>>, vector<1x316xf32>
    tpu.vector_store %arg4[%c21_72, %c0_73], %66 {strides = array<i32>} : memref<80x384xf32, #tpu.memory_space<vmem>>, vector<1x316xf32>,
    %c0_74 = arith.constant 0 : index
    %c0_75 = arith.constant 0 : index
    %c82 = arith.constant 82 : index
    %68 = vector.load %arg1[%c0_74, %c0_75, %c82] : memref<1x3x400xf32, #tpu.memory_space<vmem>>, vector<1x1x316xf32>
    %69 = vector.shape_cast %68 : vector<1x1x316xf32> to vector<1x316xf32>
    %c22_76 = arith.constant 22 : index
    %c0_77 = arith.constant 0 : index
    %70 = vector.load %arg4[%c22_76, %c0_77] : memref<80x384xf32, #tpu.memory_space<vmem>>, vector<1x316xf32>
    tpu.vector_store %arg4[%c22_76, %c0_77], %69 {strides = array<i32>} : memref<80x384xf32, #tpu.memory_space<vmem>>, vector<1x316xf32>,
    %c0_78 = arith.constant 0 : index
    %c0_79 = arith.constant 0 : index
    %c83 = arith.constant 83 : index
    %71 = vector.load %arg1[%c0_78, %c0_79, %c83] : memref<1x3x400xf32, #tpu.memory_space<vmem>>, vector<1x1x316xf32>
    %72 = vector.shape_cast %71 : vector<1x1x316xf32> to vector<1x316xf32>
    %c23_80 = arith.constant 23 : index
    %c0_81 = arith.constant 0 : index
    %73 = vector.load %arg4[%c23_80, %c0_81] : memref<80x384xf32, #tpu.memory_space<vmem>>, vector<1x316xf32>
    tpu.vector_store %arg4[%c23_80, %c0_81], %72 {strides = array<i32>} : memref<80x384xf32, #tpu.memory_space<vmem>>, vector<1x316xf32>,
    %c0_82 = arith.constant 0 : index
    %c0_83 = arith.constant 0 : index
    %c84 = arith.constant 84 : index
    %74 = vector.load %arg1[%c0_82, %c0_83, %c84] : memref<1x3x400xf32, #tpu.memory_space<vmem>>, vector<1x1x316xf32>
    %75 = vector.shape_cast %74 : vector<1x1x316xf32> to vector<1x316xf32>
    %c24_84 = arith.constant 24 : index
    %c0_85 = arith.constant 0 : index
    %76 = vector.load %arg4[%c24_84, %c0_85] : memref<80x384xf32, #tpu.memory_space<vmem>>, vector<1x316xf32>
    tpu.vector_store %arg4[%c24_84, %c0_85], %75 {strides = array<i32>} : memref<80x384xf32, #tpu.memory_space<vmem>>, vector<1x316xf32>,
    %c0_86 = arith.constant 0 : index
    %c1_87 = arith.constant 1 : index
    %c0_88 = arith.constant 0 : index
    %77 = vector.load %arg1[%c0_86, %c1_87, %c0_88] : memref<1x3x400xf32, #tpu.memory_space<vmem>>, vector<1x1x316xf32>
    %78 = vector.shape_cast %77 : vector<1x1x316xf32> to vector<1x316xf32>
    %c25 = arith.constant 25 : index
    %c0_89 = arith.constant 0 : index
    %79 = vector.load %arg4[%c25, %c0_89] : memref<80x384xf32, #tpu.memory_space<vmem>>, vector<1x316xf32>
    tpu.vector_store %arg4[%c25, %c0_89], %78 {strides = array<i32>} : memref<80x384xf32, #tpu.memory_space<vmem>>, vector<1x316xf32>,
    %c0_90 = arith.constant 0 : index
    %c1_91 = arith.constant 1 : index
    %c1_92 = arith.constant 1 : index
    %80 = vector.load %arg1[%c0_90, %c1_91, %c1_92] : memref<1x3x400xf32, #tpu.memory_space<vmem>>, vector<1x1x316xf32>
    %81 = vector.shape_cast %80 : vector<1x1x316xf32> to vector<1x316xf32>
    %c26 = arith.constant 26 : index
    %c0_93 = arith.constant 0 : index
    %82 = vector.load %arg4[%c26, %c0_93] : memref<80x384xf32, #tpu.memory_space<vmem>>, vector<1x316xf32>
    tpu.vector_store %arg4[%c26, %c0_93], %81 {strides = array<i32>} : memref<80x384xf32, #tpu.memory_space<vmem>>, vector<1x316xf32>,
    %c0_94 = arith.constant 0 : index
    %c1_95 = arith.constant 1 : index
    %c2_96 = arith.constant 2 : index
    %83 = vector.load %arg1[%c0_94, %c1_95, %c2_96] : memref<1x3x400xf32, #tpu.memory_space<vmem>>, vector<1x1x316xf32>
    %84 = vector.shape_cast %83 : vector<1x1x316xf32> to vector<1x316xf32>
    %c27 = arith.constant 27 : index
    %c0_97 = arith.constant 0 : index
    %85 = vector.load %arg4[%c27, %c0_97] : memref<80x384xf32, #tpu.memory_space<vmem>>, vector<1x316xf32>
    tpu.vector_store %arg4[%c27, %c0_97], %84 {strides = array<i32>} : memref<80x384xf32, #tpu.memory_space<vmem>>, vector<1x316xf32>,
    %c0_98 = arith.constant 0 : index
    %c1_99 = arith.constant 1 : index
    %c3_100 = arith.constant 3 : index
    %86 = vector.load %arg1[%c0_98, %c1_99, %c3_100] : memref<1x3x400xf32, #tpu.memory_space<vmem>>, vector<1x1x316xf32>
    %87 = vector.shape_cast %86 : vector<1x1x316xf32> to vector<1x316xf32>
    %c28 = arith.constant 28 : index
    %c0_101 = arith.constant 0 : index
    %88 = vector.load %arg4[%c28, %c0_101] : memref<80x384xf32, #tpu.memory_space<vmem>>, vector<1x316xf32>
    tpu.vector_store %arg4[%c28, %c0_101], %87 {strides = array<i32>} : memref<80x384xf32, #tpu.memory_space<vmem>>, vector<1x316xf32>,
    %c0_102 = arith.constant 0 : index
    %c1_103 = arith.constant 1 : index
    %c4_104 = arith.constant 4 : index
    %89 = vector.load %arg1[%c0_102, %c1_103, %c4_104] : memref<1x3x400xf32, #tpu.memory_space<vmem>>, vector<1x1x316xf32>
    %90 = vector.shape_cast %89 : vector<1x1x316xf32> to vector<1x316xf32>
    %c29 = arith.constant 29 : index
    %c0_105 = arith.constant 0 : index
    %91 = vector.load %arg4[%c29, %c0_105] : memref<80x384xf32, #tpu.memory_space<vmem>>, vector<1x316xf32>
    tpu.vector_store %arg4[%c29, %c0_105], %90 {strides = array<i32>} : memref<80x384xf32, #tpu.memory_space<vmem>>, vector<1x316xf32>,
    %c0_106 = arith.constant 0 : index
    %c1_107 = arith.constant 1 : index
    %c20_108 = arith.constant 20 : index
    %92 = vector.load %arg1[%c0_106, %c1_107, %c20_108] : memref<1x3x400xf32, #tpu.memory_space<vmem>>, vector<1x1x316xf32>
    %93 = vector.shape_cast %92 : vector<1x1x316xf32> to vector<1x316xf32>
    %c30 = arith.constant 30 : index
    %c0_109 = arith.constant 0 : index
    %94 = vector.load %arg4[%c30, %c0_109] : memref<80x384xf32, #tpu.memory_space<vmem>>, vector<1x316xf32>
    tpu.vector_store %arg4[%c30, %c0_109], %93 {strides = array<i32>} : memref<80x384xf32, #tpu.memory_space<vmem>>, vector<1x316xf32>,
    %c0_110 = arith.constant 0 : index
    %c1_111 = arith.constant 1 : index
    %c21_112 = arith.constant 21 : index
    %95 = vector.load %arg1[%c0_110, %c1_111, %c21_112] : memref<1x3x400xf32, #tpu.memory_space<vmem>>, vector<1x1x316xf32>
    %96 = vector.shape_cast %95 : vector<1x1x316xf32> to vector<1x316xf32>
    %c31 = arith.constant 31 : index
    %c0_113 = arith.constant 0 : index
    %97 = vector.load %arg4[%c31, %c0_113] : memref<80x384xf32, #tpu.memory_space<vmem>>, vector<1x316xf32>
    tpu.vector_store %arg4[%c31, %c0_113], %96 {strides = array<i32>} : memref<80x384xf32, #tpu.memory_space<vmem>>, vector<1x316xf32>,
    %c0_114 = arith.constant 0 : index
    %c1_115 = arith.constant 1 : index
    %c22_116 = arith.constant 22 : index
    %98 = vector.load %arg1[%c0_114, %c1_115, %c22_116] : memref<1x3x400xf32, #tpu.memory_space<vmem>>, vector<1x1x316xf32>
    %99 = vector.shape_cast %98 : vector<1x1x316xf32> to vector<1x316xf32>
    %c32 = arith.constant 32 : index
    %c0_117 = arith.constant 0 : index
    %100 = vector.load %arg4[%c32, %c0_117] : memref<80x384xf32, #tpu.memory_space<vmem>>, vector<1x316xf32>
    tpu.vector_store %arg4[%c32, %c0_117], %99 {strides = array<i32>} : memref<80x384xf32, #tpu.memory_space<vmem>>, vector<1x316xf32>,
    %c0_118 = arith.constant 0 : index
    %c1_119 = arith.constant 1 : index
    %c23_120 = arith.constant 23 : index
    %101 = vector.load %arg1[%c0_118, %c1_119, %c23_120] : memref<1x3x400xf32, #tpu.memory_space<vmem>>, vector<1x1x316xf32>
    %102 = vector.shape_cast %101 : vector<1x1x316xf32> to vector<1x316xf32>
    %c33 = arith.constant 33 : index
    %c0_121 = arith.constant 0 : index
    %103 = vector.load %arg4[%c33, %c0_121] : memref<80x384xf32, #tpu.memory_space<vmem>>, vector<1x316xf32>
    tpu.vector_store %arg4[%c33, %c0_121], %102 {strides = array<i32>} : memref<80x384xf32, #tpu.memory_space<vmem>>, vector<1x316xf32>,
    %c0_122 = arith.constant 0 : index
    %c1_123 = arith.constant 1 : index
    %c24_124 = arith.constant 24 : index
    %104 = vector.load %arg1[%c0_122, %c1_123, %c24_124] : memref<1x3x400xf32, #tpu.memory_space<vmem>>, vector<1x1x316xf32>
    %105 = vector.shape_cast %104 : vector<1x1x316xf32> to vector<1x316xf32>
    %c34 = arith.constant 34 : index
    %c0_125 = arith.constant 0 : index
    %106 = vector.load %arg4[%c34, %c0_125] : memref<80x384xf32, #tpu.memory_space<vmem>>, vector<1x316xf32>
    tpu.vector_store %arg4[%c34, %c0_125], %105 {strides = array<i32>} : memref<80x384xf32, #tpu.memory_space<vmem>>, vector<1x316xf32>,
    %c0_126 = arith.constant 0 : index
    %c1_127 = arith.constant 1 : index
    %c40_128 = arith.constant 40 : index
    %107 = vector.load %arg1[%c0_126, %c1_127, %c40_128] : memref<1x3x400xf32, #tpu.memory_space<vmem>>, vector<1x1x316xf32>
    %108 = vector.shape_cast %107 : vector<1x1x316xf32> to vector<1x316xf32>
    %c35 = arith.constant 35 : index
    %c0_129 = arith.constant 0 : index
    %109 = vector.load %arg4[%c35, %c0_129] : memref<80x384xf32, #tpu.memory_space<vmem>>, vector<1x316xf32>
    tpu.vector_store %arg4[%c35, %c0_129], %108 {strides = array<i32>} : memref<80x384xf32, #tpu.memory_space<vmem>>, vector<1x316xf32>,
    %c0_130 = arith.constant 0 : index
    %c1_131 = arith.constant 1 : index
    %c41_132 = arith.constant 41 : index
    %110 = vector.load %arg1[%c0_130, %c1_131, %c41_132] : memref<1x3x400xf32, #tpu.memory_space<vmem>>, vector<1x1x316xf32>
    %111 = vector.shape_cast %110 : vector<1x1x316xf32> to vector<1x316xf32>
    %c36 = arith.constant 36 : index
    %c0_133 = arith.constant 0 : index
    %112 = vector.load %arg4[%c36, %c0_133] : memref<80x384xf32, #tpu.memory_space<vmem>>, vector<1x316xf32>
    tpu.vector_store %arg4[%c36, %c0_133], %111 {strides = array<i32>} : memref<80x384xf32, #tpu.memory_space<vmem>>, vector<1x316xf32>,
    %c0_134 = arith.constant 0 : index
    %c1_135 = arith.constant 1 : index
    %c42_136 = arith.constant 42 : index
    %113 = vector.load %arg1[%c0_134, %c1_135, %c42_136] : memref<1x3x400xf32, #tpu.memory_space<vmem>>, vector<1x1x316xf32>
    %114 = vector.shape_cast %113 : vector<1x1x316xf32> to vector<1x316xf32>
    %c37 = arith.constant 37 : index
    %c0_137 = arith.constant 0 : index
    %115 = vector.load %arg4[%c37, %c0_137] : memref<80x384xf32, #tpu.memory_space<vmem>>, vector<1x316xf32>
    tpu.vector_store %arg4[%c37, %c0_137], %114 {strides = array<i32>} : memref<80x384xf32, #tpu.memory_space<vmem>>, vector<1x316xf32>,
    %c0_138 = arith.constant 0 : index
    %c1_139 = arith.constant 1 : index
    %c43_140 = arith.constant 43 : index
    %116 = vector.load %arg1[%c0_138, %c1_139, %c43_140] : memref<1x3x400xf32, #tpu.memory_space<vmem>>, vector<1x1x316xf32>
    %117 = vector.shape_cast %116 : vector<1x1x316xf32> to vector<1x316xf32>
    %c38 = arith.constant 38 : index
    %c0_141 = arith.constant 0 : index
    %118 = vector.load %arg4[%c38, %c0_141] : memref<80x384xf32, #tpu.memory_space<vmem>>, vector<1x316xf32>
    tpu.vector_store %arg4[%c38, %c0_141], %117 {strides = array<i32>} : memref<80x384xf32, #tpu.memory_space<vmem>>, vector<1x316xf32>,
    %c0_142 = arith.constant 0 : index
    %c1_143 = arith.constant 1 : index
    %c44_144 = arith.constant 44 : index
    %119 = vector.load %arg1[%c0_142, %c1_143, %c44_144] : memref<1x3x400xf32, #tpu.memory_space<vmem>>, vector<1x1x316xf32>
    %120 = vector.shape_cast %119 : vector<1x1x316xf32> to vector<1x316xf32>
    %c39 = arith.constant 39 : index
    %c0_145 = arith.constant 0 : index
    %121 = vector.load %arg4[%c39, %c0_145] : memref<80x384xf32, #tpu.memory_space<vmem>>, vector<1x316xf32>
    tpu.vector_store %arg4[%c39, %c0_145], %120 {strides = array<i32>} : memref<80x384xf32, #tpu.memory_space<vmem>>, vector<1x316xf32>,
    %c0_146 = arith.constant 0 : index
    %c1_147 = arith.constant 1 : index
    %c60_148 = arith.constant 60 : index
    %122 = vector.load %arg1[%c0_146, %c1_147, %c60_148] : memref<1x3x400xf32, #tpu.memory_space<vmem>>, vector<1x1x316xf32>
    %123 = vector.shape_cast %122 : vector<1x1x316xf32> to vector<1x316xf32>
    %c40_149 = arith.constant 40 : index
    %c0_150 = arith.constant 0 : index
    %124 = vector.load %arg4[%c40_149, %c0_150] : memref<80x384xf32, #tpu.memory_space<vmem>>, vector<1x316xf32>
    tpu.vector_store %arg4[%c40_149, %c0_150], %123 {strides = array<i32>} : memref<80x384xf32, #tpu.memory_space<vmem>>, vector<1x316xf32>,
    %c0_151 = arith.constant 0 : index
    %c1_152 = arith.constant 1 : index
    %c61_153 = arith.constant 61 : index
    %125 = vector.load %arg1[%c0_151, %c1_152, %c61_153] : memref<1x3x400xf32, #tpu.memory_space<vmem>>, vector<1x1x316xf32>
    %126 = vector.shape_cast %125 : vector<1x1x316xf32> to vector<1x316xf32>
    %c41_154 = arith.constant 41 : index
    %c0_155 = arith.constant 0 : index
    %127 = vector.load %arg4[%c41_154, %c0_155] : memref<80x384xf32, #tpu.memory_space<vmem>>, vector<1x316xf32>
    tpu.vector_store %arg4[%c41_154, %c0_155], %126 {strides = array<i32>} : memref<80x384xf32, #tpu.memory_space<vmem>>, vector<1x316xf32>,
    %c0_156 = arith.constant 0 : index
    %c1_157 = arith.constant 1 : index
    %c62_158 = arith.constant 62 : index
    %128 = vector.load %arg1[%c0_156, %c1_157, %c62_158] : memref<1x3x400xf32, #tpu.memory_space<vmem>>, vector<1x1x316xf32>
    %129 = vector.shape_cast %128 : vector<1x1x316xf32> to vector<1x316xf32>
    %c42_159 = arith.constant 42 : index
    %c0_160 = arith.constant 0 : index
    %130 = vector.load %arg4[%c42_159, %c0_160] : memref<80x384xf32, #tpu.memory_space<vmem>>, vector<1x316xf32>
    tpu.vector_store %arg4[%c42_159, %c0_160], %129 {strides = array<i32>} : memref<80x384xf32, #tpu.memory_space<vmem>>, vector<1x316xf32>,
    %c0_161 = arith.constant 0 : index
    %c1_162 = arith.constant 1 : index
    %c63_163 = arith.constant 63 : index
    %131 = vector.load %arg1[%c0_161, %c1_162, %c63_163] : memref<1x3x400xf32, #tpu.memory_space<vmem>>, vector<1x1x316xf32>
    %132 = vector.shape_cast %131 : vector<1x1x316xf32> to vector<1x316xf32>
    %c43_164 = arith.constant 43 : index
    %c0_165 = arith.constant 0 : index
    %133 = vector.load %arg4[%c43_164, %c0_165] : memref<80x384xf32, #tpu.memory_space<vmem>>, vector<1x316xf32>
    tpu.vector_store %arg4[%c43_164, %c0_165], %132 {strides = array<i32>} : memref<80x384xf32, #tpu.memory_space<vmem>>, vector<1x316xf32>,
    %c0_166 = arith.constant 0 : index
    %c1_167 = arith.constant 1 : index
    %c64_168 = arith.constant 64 : index
    %134 = vector.load %arg1[%c0_166, %c1_167, %c64_168] : memref<1x3x400xf32, #tpu.memory_space<vmem>>, vector<1x1x316xf32>
    %135 = vector.shape_cast %134 : vector<1x1x316xf32> to vector<1x316xf32>
    %c44_169 = arith.constant 44 : index
    %c0_170 = arith.constant 0 : index
    %136 = vector.load %arg4[%c44_169, %c0_170] : memref<80x384xf32, #tpu.memory_space<vmem>>, vector<1x316xf32>
    tpu.vector_store %arg4[%c44_169, %c0_170], %135 {strides = array<i32>} : memref<80x384xf32, #tpu.memory_space<vmem>>, vector<1x316xf32>,
    %c0_171 = arith.constant 0 : index
    %c1_172 = arith.constant 1 : index
    %c80_173 = arith.constant 80 : index
    %137 = vector.load %arg1[%c0_171, %c1_172, %c80_173] : memref<1x3x400xf32, #tpu.memory_space<vmem>>, vector<1x1x316xf32>
    %138 = vector.shape_cast %137 : vector<1x1x316xf32> to vector<1x316xf32>
    %c45 = arith.constant 45 : index
    %c0_174 = arith.constant 0 : index
    %139 = vector.load %arg4[%c45, %c0_174] : memref<80x384xf32, #tpu.memory_space<vmem>>, vector<1x316xf32>
    tpu.vector_store %arg4[%c45, %c0_174], %138 {strides = array<i32>} : memref<80x384xf32, #tpu.memory_space<vmem>>, vector<1x316xf32>,
    %c0_175 = arith.constant 0 : index
    %c1_176 = arith.constant 1 : index
    %c81_177 = arith.constant 81 : index
    %140 = vector.load %arg1[%c0_175, %c1_176, %c81_177] : memref<1x3x400xf32, #tpu.memory_space<vmem>>, vector<1x1x316xf32>
    %141 = vector.shape_cast %140 : vector<1x1x316xf32> to vector<1x316xf32>
    %c46 = arith.constant 46 : index
    %c0_178 = arith.constant 0 : index
    %142 = vector.load %arg4[%c46, %c0_178] : memref<80x384xf32, #tpu.memory_space<vmem>>, vector<1x316xf32>
    tpu.vector_store %arg4[%c46, %c0_178], %141 {strides = array<i32>} : memref<80x384xf32, #tpu.memory_space<vmem>>, vector<1x316xf32>,
    %c0_179 = arith.constant 0 : index
    %c1_180 = arith.constant 1 : index
    %c82_181 = arith.constant 82 : index
    %143 = vector.load %arg1[%c0_179, %c1_180, %c82_181] : memref<1x3x400xf32, #tpu.memory_space<vmem>>, vector<1x1x316xf32>
    %144 = vector.shape_cast %143 : vector<1x1x316xf32> to vector<1x316xf32>
    %c47 = arith.constant 47 : index
    %c0_182 = arith.constant 0 : index
    %145 = vector.load %arg4[%c47, %c0_182] : memref<80x384xf32, #tpu.memory_space<vmem>>, vector<1x316xf32>
    tpu.vector_store %arg4[%c47, %c0_182], %144 {strides = array<i32>} : memref<80x384xf32, #tpu.memory_space<vmem>>, vector<1x316xf32>,
    %c0_183 = arith.constant 0 : index
    %c1_184 = arith.constant 1 : index
    %c83_185 = arith.constant 83 : index
    %146 = vector.load %arg1[%c0_183, %c1_184, %c83_185] : memref<1x3x400xf32, #tpu.memory_space<vmem>>, vector<1x1x316xf32>
    %147 = vector.shape_cast %146 : vector<1x1x316xf32> to vector<1x316xf32>
    %c48 = arith.constant 48 : index
    %c0_186 = arith.constant 0 : index
    %148 = vector.load %arg4[%c48, %c0_186] : memref<80x384xf32, #tpu.memory_space<vmem>>, vector<1x316xf32>
    tpu.vector_store %arg4[%c48, %c0_186], %147 {strides = array<i32>} : memref<80x384xf32, #tpu.memory_space<vmem>>, vector<1x316xf32>,
    %c0_187 = arith.constant 0 : index
    %c1_188 = arith.constant 1 : index
    %c84_189 = arith.constant 84 : index
    %149 = vector.load %arg1[%c0_187, %c1_188, %c84_189] : memref<1x3x400xf32, #tpu.memory_space<vmem>>, vector<1x1x316xf32>
    %150 = vector.shape_cast %149 : vector<1x1x316xf32> to vector<1x316xf32>
    %c49 = arith.constant 49 : index
    %c0_190 = arith.constant 0 : index
    %151 = vector.load %arg4[%c49, %c0_190] : memref<80x384xf32, #tpu.memory_space<vmem>>, vector<1x316xf32>
    tpu.vector_store %arg4[%c49, %c0_190], %150 {strides = array<i32>} : memref<80x384xf32, #tpu.memory_space<vmem>>, vector<1x316xf32>,
    %c0_191 = arith.constant 0 : index
    %c2_192 = arith.constant 2 : index
    %c0_193 = arith.constant 0 : index
    %152 = vector.load %arg1[%c0_191, %c2_192, %c0_193] : memref<1x3x400xf32, #tpu.memory_space<vmem>>, vector<1x1x316xf32>
    %153 = vector.shape_cast %152 : vector<1x1x316xf32> to vector<1x316xf32>
    %c50 = arith.constant 50 : index
    %c0_194 = arith.constant 0 : index
    %154 = vector.load %arg4[%c50, %c0_194] : memref<80x384xf32, #tpu.memory_space<vmem>>, vector<1x316xf32>
    tpu.vector_store %arg4[%c50, %c0_194], %153 {strides = array<i32>} : memref<80x384xf32, #tpu.memory_space<vmem>>, vector<1x316xf32>,
    %c0_195 = arith.constant 0 : index
    %c2_196 = arith.constant 2 : index
    %c1_197 = arith.constant 1 : index
    %155 = vector.load %arg1[%c0_195, %c2_196, %c1_197] : memref<1x3x400xf32, #tpu.memory_space<vmem>>, vector<1x1x316xf32>
    %156 = vector.shape_cast %155 : vector<1x1x316xf32> to vector<1x316xf32>
    %c51 = arith.constant 51 : index
    %c0_198 = arith.constant 0 : index
    %157 = vector.load %arg4[%c51, %c0_198] : memref<80x384xf32, #tpu.memory_space<vmem>>, vector<1x316xf32>
    tpu.vector_store %arg4[%c51, %c0_198], %156 {strides = array<i32>} : memref<80x384xf32, #tpu.memory_space<vmem>>, vector<1x316xf32>,
    %c0_199 = arith.constant 0 : index
    %c2_200 = arith.constant 2 : index
    %c2_201 = arith.constant 2 : index
    %158 = vector.load %arg1[%c0_199, %c2_200, %c2_201] : memref<1x3x400xf32, #tpu.memory_space<vmem>>, vector<1x1x316xf32>
    %159 = vector.shape_cast %158 : vector<1x1x316xf32> to vector<1x316xf32>
    %c52 = arith.constant 52 : index
    %c0_202 = arith.constant 0 : index
    %160 = vector.load %arg4[%c52, %c0_202] : memref<80x384xf32, #tpu.memory_space<vmem>>, vector<1x316xf32>
    tpu.vector_store %arg4[%c52, %c0_202], %159 {strides = array<i32>} : memref<80x384xf32, #tpu.memory_space<vmem>>, vector<1x316xf32>,
    %c0_203 = arith.constant 0 : index
    %c2_204 = arith.constant 2 : index
    %c3_205 = arith.constant 3 : index
    %161 = vector.load %arg1[%c0_203, %c2_204, %c3_205] : memref<1x3x400xf32, #tpu.memory_space<vmem>>, vector<1x1x316xf32>
    %162 = vector.shape_cast %161 : vector<1x1x316xf32> to vector<1x316xf32>
    %c53 = arith.constant 53 : index
    %c0_206 = arith.constant 0 : index
    %163 = vector.load %arg4[%c53, %c0_206] : memref<80x384xf32, #tpu.memory_space<vmem>>, vector<1x316xf32>
    tpu.vector_store %arg4[%c53, %c0_206], %162 {strides = array<i32>} : memref<80x384xf32, #tpu.memory_space<vmem>>, vector<1x316xf32>,
    %c0_207 = arith.constant 0 : index
    %c2_208 = arith.constant 2 : index
    %c4_209 = arith.constant 4 : index
    %164 = vector.load %arg1[%c0_207, %c2_208, %c4_209] : memref<1x3x400xf32, #tpu.memory_space<vmem>>, vector<1x1x316xf32>
    %165 = vector.shape_cast %164 : vector<1x1x316xf32> to vector<1x316xf32>
    %c54 = arith.constant 54 : index
    %c0_210 = arith.constant 0 : index
    %166 = vector.load %arg4[%c54, %c0_210] : memref<80x384xf32, #tpu.memory_space<vmem>>, vector<1x316xf32>
    tpu.vector_store %arg4[%c54, %c0_210], %165 {strides = array<i32>} : memref<80x384xf32, #tpu.memory_space<vmem>>, vector<1x316xf32>,
    %c0_211 = arith.constant 0 : index
    %c2_212 = arith.constant 2 : index
    %c20_213 = arith.constant 20 : index
    %167 = vector.load %arg1[%c0_211, %c2_212, %c20_213] : memref<1x3x400xf32, #tpu.memory_space<vmem>>, vector<1x1x316xf32>
    %168 = vector.shape_cast %167 : vector<1x1x316xf32> to vector<1x316xf32>
    %c55 = arith.constant 55 : index
    %c0_214 = arith.constant 0 : index
    %169 = vector.load %arg4[%c55, %c0_214] : memref<80x384xf32, #tpu.memory_space<vmem>>, vector<1x316xf32>
    tpu.vector_store %arg4[%c55, %c0_214], %168 {strides = array<i32>} : memref<80x384xf32, #tpu.memory_space<vmem>>, vector<1x316xf32>,
    %c0_215 = arith.constant 0 : index
    %c2_216 = arith.constant 2 : index
    %c21_217 = arith.constant 21 : index
    %170 = vector.load %arg1[%c0_215, %c2_216, %c21_217] : memref<1x3x400xf32, #tpu.memory_space<vmem>>, vector<1x1x316xf32>
    %171 = vector.shape_cast %170 : vector<1x1x316xf32> to vector<1x316xf32>
    %c56 = arith.constant 56 : index
    %c0_218 = arith.constant 0 : index
    %172 = vector.load %arg4[%c56, %c0_218] : memref<80x384xf32, #tpu.memory_space<vmem>>, vector<1x316xf32>
    tpu.vector_store %arg4[%c56, %c0_218], %171 {strides = array<i32>} : memref<80x384xf32, #tpu.memory_space<vmem>>, vector<1x316xf32>,
    %c0_219 = arith.constant 0 : index
    %c2_220 = arith.constant 2 : index
    %c22_221 = arith.constant 22 : index
    %173 = vector.load %arg1[%c0_219, %c2_220, %c22_221] : memref<1x3x400xf32, #tpu.memory_space<vmem>>, vector<1x1x316xf32>
    %174 = vector.shape_cast %173 : vector<1x1x316xf32> to vector<1x316xf32>
    %c57 = arith.constant 57 : index
    %c0_222 = arith.constant 0 : index
    %175 = vector.load %arg4[%c57, %c0_222] : memref<80x384xf32, #tpu.memory_space<vmem>>, vector<1x316xf32>
    tpu.vector_store %arg4[%c57, %c0_222], %174 {strides = array<i32>} : memref<80x384xf32, #tpu.memory_space<vmem>>, vector<1x316xf32>,
    %c0_223 = arith.constant 0 : index
    %c2_224 = arith.constant 2 : index
    %c23_225 = arith.constant 23 : index
    %176 = vector.load %arg1[%c0_223, %c2_224, %c23_225] : memref<1x3x400xf32, #tpu.memory_space<vmem>>, vector<1x1x316xf32>
    %177 = vector.shape_cast %176 : vector<1x1x316xf32> to vector<1x316xf32>
    %c58 = arith.constant 58 : index
    %c0_226 = arith.constant 0 : index
    %178 = vector.load %arg4[%c58, %c0_226] : memref<80x384xf32, #tpu.memory_space<vmem>>, vector<1x316xf32>
    tpu.vector_store %arg4[%c58, %c0_226], %177 {strides = array<i32>} : memref<80x384xf32, #tpu.memory_space<vmem>>, vector<1x316xf32>,
    %c0_227 = arith.constant 0 : index
    %c2_228 = arith.constant 2 : index
    %c24_229 = arith.constant 24 : index
    %179 = vector.load %arg1[%c0_227, %c2_228, %c24_229] : memref<1x3x400xf32, #tpu.memory_space<vmem>>, vector<1x1x316xf32>
    %180 = vector.shape_cast %179 : vector<1x1x316xf32> to vector<1x316xf32>
    %c59 = arith.constant 59 : index
    %c0_230 = arith.constant 0 : index
    %181 = vector.load %arg4[%c59, %c0_230] : memref<80x384xf32, #tpu.memory_space<vmem>>, vector<1x316xf32>
    tpu.vector_store %arg4[%c59, %c0_230], %180 {strides = array<i32>} : memref<80x384xf32, #tpu.memory_space<vmem>>, vector<1x316xf32>,
    %c0_231 = arith.constant 0 : index
    %c2_232 = arith.constant 2 : index
    %c40_233 = arith.constant 40 : index
    %182 = vector.load %arg1[%c0_231, %c2_232, %c40_233] : memref<1x3x400xf32, #tpu.memory_space<vmem>>, vector<1x1x316xf32>
    %183 = vector.shape_cast %182 : vector<1x1x316xf32> to vector<1x316xf32>
    %c60_234 = arith.constant 60 : index
    %c0_235 = arith.constant 0 : index
    %184 = vector.load %arg4[%c60_234, %c0_235] : memref<80x384xf32, #tpu.memory_space<vmem>>, vector<1x316xf32>
    tpu.vector_store %arg4[%c60_234, %c0_235], %183 {strides = array<i32>} : memref<80x384xf32, #tpu.memory_space<vmem>>, vector<1x316xf32>,
    %c0_236 = arith.constant 0 : index
    %c2_237 = arith.constant 2 : index
    %c41_238 = arith.constant 41 : index
    %185 = vector.load %arg1[%c0_236, %c2_237, %c41_238] : memref<1x3x400xf32, #tpu.memory_space<vmem>>, vector<1x1x316xf32>
    %186 = vector.shape_cast %185 : vector<1x1x316xf32> to vector<1x316xf32>
    %c61_239 = arith.constant 61 : index
    %c0_240 = arith.constant 0 : index
    %187 = vector.load %arg4[%c61_239, %c0_240] : memref<80x384xf32, #tpu.memory_space<vmem>>, vector<1x316xf32>
    tpu.vector_store %arg4[%c61_239, %c0_240], %186 {strides = array<i32>} : memref<80x384xf32, #tpu.memory_space<vmem>>, vector<1x316xf32>,
    %c0_241 = arith.constant 0 : index
    %c2_242 = arith.constant 2 : index
    %c42_243 = arith.constant 42 : index
    %188 = vector.load %arg1[%c0_241, %c2_242, %c42_243] : memref<1x3x400xf32, #tpu.memory_space<vmem>>, vector<1x1x316xf32>
    %189 = vector.shape_cast %188 : vector<1x1x316xf32> to vector<1x316xf32>
    %c62_244 = arith.constant 62 : index
    %c0_245 = arith.constant 0 : index
    %190 = vector.load %arg4[%c62_244, %c0_245] : memref<80x384xf32, #tpu.memory_space<vmem>>, vector<1x316xf32>
    tpu.vector_store %arg4[%c62_244, %c0_245], %189 {strides = array<i32>} : memref<80x384xf32, #tpu.memory_space<vmem>>, vector<1x316xf32>,
    %c0_246 = arith.constant 0 : index
    %c2_247 = arith.constant 2 : index
    %c43_248 = arith.constant 43 : index
    %191 = vector.load %arg1[%c0_246, %c2_247, %c43_248] : memref<1x3x400xf32, #tpu.memory_space<vmem>>, vector<1x1x316xf32>
    %192 = vector.shape_cast %191 : vector<1x1x316xf32> to vector<1x316xf32>
    %c63_249 = arith.constant 63 : index
    %c0_250 = arith.constant 0 : index
    %193 = vector.load %arg4[%c63_249, %c0_250] : memref<80x384xf32, #tpu.memory_space<vmem>>, vector<1x316xf32>
    tpu.vector_store %arg4[%c63_249, %c0_250], %192 {strides = array<i32>} : memref<80x384xf32, #tpu.memory_space<vmem>>, vector<1x316xf32>,
    %c0_251 = arith.constant 0 : index
    %c2_252 = arith.constant 2 : index
    %c44_253 = arith.constant 44 : index
    %194 = vector.load %arg1[%c0_251, %c2_252, %c44_253] : memref<1x3x400xf32, #tpu.memory_space<vmem>>, vector<1x1x316xf32>
    %195 = vector.shape_cast %194 : vector<1x1x316xf32> to vector<1x316xf32>
    %c64_254 = arith.constant 64 : index
    %c0_255 = arith.constant 0 : index
    %196 = vector.load %arg4[%c64_254, %c0_255] : memref<80x384xf32, #tpu.memory_space<vmem>>, vector<1x316xf32>
    tpu.vector_store %arg4[%c64_254, %c0_255], %195 {strides = array<i32>} : memref<80x384xf32, #tpu.memory_space<vmem>>, vector<1x316xf32>,
    %c0_256 = arith.constant 0 : index
    %c2_257 = arith.constant 2 : index
    %c60_258 = arith.constant 60 : index
    %197 = vector.load %arg1[%c0_256, %c2_257, %c60_258] : memref<1x3x400xf32, #tpu.memory_space<vmem>>, vector<1x1x316xf32>
    %198 = vector.shape_cast %197 : vector<1x1x316xf32> to vector<1x316xf32>
    %c65 = arith.constant 65 : index
    %c0_259 = arith.constant 0 : index
    %199 = vector.load %arg4[%c65, %c0_259] : memref<80x384xf32, #tpu.memory_space<vmem>>, vector<1x316xf32>
    tpu.vector_store %arg4[%c65, %c0_259], %198 {strides = array<i32>} : memref<80x384xf32, #tpu.memory_space<vmem>>, vector<1x316xf32>,
    %c0_260 = arith.constant 0 : index
    %c2_261 = arith.constant 2 : index
    %c61_262 = arith.constant 61 : index
    %200 = vector.load %arg1[%c0_260, %c2_261, %c61_262] : memref<1x3x400xf32, #tpu.memory_space<vmem>>, vector<1x1x316xf32>
    %201 = vector.shape_cast %200 : vector<1x1x316xf32> to vector<1x316xf32>
    %c66 = arith.constant 66 : index
    %c0_263 = arith.constant 0 : index
    %202 = vector.load %arg4[%c66, %c0_263] : memref<80x384xf32, #tpu.memory_space<vmem>>, vector<1x316xf32>
    tpu.vector_store %arg4[%c66, %c0_263], %201 {strides = array<i32>} : memref<80x384xf32, #tpu.memory_space<vmem>>, vector<1x316xf32>,
    %c0_264 = arith.constant 0 : index
    %c2_265 = arith.constant 2 : index
    %c62_266 = arith.constant 62 : index
    %203 = vector.load %arg1[%c0_264, %c2_265, %c62_266] : memref<1x3x400xf32, #tpu.memory_space<vmem>>, vector<1x1x316xf32>
    %204 = vector.shape_cast %203 : vector<1x1x316xf32> to vector<1x316xf32>
    %c67 = arith.constant 67 : index
    %c0_267 = arith.constant 0 : index
    %205 = vector.load %arg4[%c67, %c0_267] : memref<80x384xf32, #tpu.memory_space<vmem>>, vector<1x316xf32>
    tpu.vector_store %arg4[%c67, %c0_267], %204 {strides = array<i32>} : memref<80x384xf32, #tpu.memory_space<vmem>>, vector<1x316xf32>,
    %c0_268 = arith.constant 0 : index
    %c2_269 = arith.constant 2 : index
    %c63_270 = arith.constant 63 : index
    %206 = vector.load %arg1[%c0_268, %c2_269, %c63_270] : memref<1x3x400xf32, #tpu.memory_space<vmem>>, vector<1x1x316xf32>
    %207 = vector.shape_cast %206 : vector<1x1x316xf32> to vector<1x316xf32>
    %c68 = arith.constant 68 : index
    %c0_271 = arith.constant 0 : index
    %208 = vector.load %arg4[%c68, %c0_271] : memref<80x384xf32, #tpu.memory_space<vmem>>, vector<1x316xf32>
    tpu.vector_store %arg4[%c68, %c0_271], %207 {strides = array<i32>} : memref<80x384xf32, #tpu.memory_space<vmem>>, vector<1x316xf32>,
    %c0_272 = arith.constant 0 : index
    %c2_273 = arith.constant 2 : index
    %c64_274 = arith.constant 64 : index
    %209 = vector.load %arg1[%c0_272, %c2_273, %c64_274] : memref<1x3x400xf32, #tpu.memory_space<vmem>>, vector<1x1x316xf32>
    %210 = vector.shape_cast %209 : vector<1x1x316xf32> to vector<1x316xf32>
    %c69 = arith.constant 69 : index
    %c0_275 = arith.constant 0 : index
    %211 = vector.load %arg4[%c69, %c0_275] : memref<80x384xf32, #tpu.memory_space<vmem>>, vector<1x316xf32>
    tpu.vector_store %arg4[%c69, %c0_275], %210 {strides = array<i32>} : memref<80x384xf32, #tpu.memory_space<vmem>>, vector<1x316xf32>,
    %c0_276 = arith.constant 0 : index
    %c2_277 = arith.constant 2 : index
    %c80_278 = arith.constant 80 : index
    %212 = vector.load %arg1[%c0_276, %c2_277, %c80_278] : memref<1x3x400xf32, #tpu.memory_space<vmem>>, vector<1x1x316xf32>
    %213 = vector.shape_cast %212 : vector<1x1x316xf32> to vector<1x316xf32>
    %c70 = arith.constant 70 : index
    %c0_279 = arith.constant 0 : index
    %214 = vector.load %arg4[%c70, %c0_279] : memref<80x384xf32, #tpu.memory_space<vmem>>, vector<1x316xf32>
    tpu.vector_store %arg4[%c70, %c0_279], %213 {strides = array<i32>} : memref<80x384xf32, #tpu.memory_space<vmem>>, vector<1x316xf32>,
    %c0_280 = arith.constant 0 : index
    %c2_281 = arith.constant 2 : index
    %c81_282 = arith.constant 81 : index
    %215 = vector.load %arg1[%c0_280, %c2_281, %c81_282] : memref<1x3x400xf32, #tpu.memory_space<vmem>>, vector<1x1x316xf32>
    %216 = vector.shape_cast %215 : vector<1x1x316xf32> to vector<1x316xf32>
    %c71 = arith.constant 71 : index
    %c0_283 = arith.constant 0 : index
    %217 = vector.load %arg4[%c71, %c0_283] : memref<80x384xf32, #tpu.memory_space<vmem>>, vector<1x316xf32>
    tpu.vector_store %arg4[%c71, %c0_283], %216 {strides = array<i32>} : memref<80x384xf32, #tpu.memory_space<vmem>>, vector<1x316xf32>,
    %c0_284 = arith.constant 0 : index
    %c2_285 = arith.constant 2 : index
    %c82_286 = arith.constant 82 : index
    %218 = vector.load %arg1[%c0_284, %c2_285, %c82_286] : memref<1x3x400xf32, #tpu.memory_space<vmem>>, vector<1x1x316xf32>
    %219 = vector.shape_cast %218 : vector<1x1x316xf32> to vector<1x316xf32>
    %c72 = arith.constant 72 : index
    %c0_287 = arith.constant 0 : index
    %220 = vector.load %arg4[%c72, %c0_287] : memref<80x384xf32, #tpu.memory_space<vmem>>, vector<1x316xf32>
    tpu.vector_store %arg4[%c72, %c0_287], %219 {strides = array<i32>} : memref<80x384xf32, #tpu.memory_space<vmem>>, vector<1x316xf32>,
    %c0_288 = arith.constant 0 : index
    %c2_289 = arith.constant 2 : index
    %c83_290 = arith.constant 83 : index
    %221 = vector.load %arg1[%c0_288, %c2_289, %c83_290] : memref<1x3x400xf32, #tpu.memory_space<vmem>>, vector<1x1x316xf32>
    %222 = vector.shape_cast %221 : vector<1x1x316xf32> to vector<1x316xf32>
    %c73 = arith.constant 73 : index
    %c0_291 = arith.constant 0 : index
    %223 = vector.load %arg4[%c73, %c0_291] : memref<80x384xf32, #tpu.memory_space<vmem>>, vector<1x316xf32>
    tpu.vector_store %arg4[%c73, %c0_291], %222 {strides = array<i32>} : memref<80x384xf32, #tpu.memory_space<vmem>>, vector<1x316xf32>,
    %c0_292 = arith.constant 0 : index
    %c2_293 = arith.constant 2 : index
    %c84_294 = arith.constant 84 : index
    %224 = vector.load %arg1[%c0_292, %c2_293, %c84_294] : memref<1x3x400xf32, #tpu.memory_space<vmem>>, vector<1x1x316xf32>
    %225 = vector.shape_cast %224 : vector<1x1x316xf32> to vector<1x316xf32>
    %c74 = arith.constant 74 : index
    %c0_295 = arith.constant 0 : index
    %226 = vector.load %arg4[%c74, %c0_295] : memref<80x384xf32, #tpu.memory_space<vmem>>, vector<1x316xf32>
    tpu.vector_store %arg4[%c74, %c0_295], %225 {strides = array<i32>} : memref<80x384xf32, #tpu.memory_space<vmem>>, vector<1x316xf32>,
    %c0_296 = arith.constant 0 : index
    %c0_297 = arith.constant 0 : index
    %227 = vector.load %arg2[%c0_296, %c0_297] : memref<48x80xf32, #tpu.memory_space<vmem>>, vector<48x80xf32>
    %c0_298 = arith.constant 0 : index
    %c0_299 = arith.constant 0 : index
    %228 = vector.load %arg4[%c0_298, %c0_299] : memref<80x384xf32, #tpu.memory_space<vmem>>, vector<80x384xf32>
    %cst_300 = arith.constant dense<0.000000e+00> : vector<48x384xf32>
    %229 = tpu.matmul %227, %228, %cst_300 {dimension_numbers = #tpu.dot_dimension_numbers<[1], [0], [0], [1], [0, 0, 1, 1], [], []>} : vector<48x80xf32>, vector<80x384xf32>, vector<48x384xf32> -> vector<48x384xf32>
    %230 = vector.extract_strided_slice %229 {offsets = [0, 0], sizes = [24, 384], strides = [1, 1]} : vector<48x384xf32> to vector<24x384xf32>
    %231 = vector.extract_strided_slice %229 {offsets = [24, 0], sizes = [24, 384], strides = [1, 1]} : vector<48x384xf32> to vector<24x384xf32>
    %232 = arith.mulf %230, %231 : vector<24x384xf32>
    %233 = vector.extract_strided_slice %232 {offsets = [0, 0], sizes = [8, 384], strides = [1, 1]} : vector<24x384xf32> to vector<8x384xf32>
    %234 = vector.extract_strided_slice %232 {offsets = [8, 0], sizes = [8, 384], strides = [1, 1]} : vector<24x384xf32> to vector<8x384xf32>
    %235 = arith.addf %233, %234 : vector<8x384xf32>
    %236 = vector.extract_strided_slice %232 {offsets = [16, 0], sizes = [8, 384], strides = [1, 1]} : vector<24x384xf32> to vector<8x384xf32>
    %237 = arith.addf %235, %236 : vector<8x384xf32>
    %c0_301 = arith.constant 0 : index
    %c0_302 = arith.constant 0 : index
    %c0_303 = arith.constant 0 : index
    %238 = vector.load %arg3[%c0_301, %c0_302, %c0_303] : memref<1x8x384xf32, #tpu.memory_space<vmem>>, vector<1x8x384xf32>
    %239 = vector.shape_cast %238 : vector<1x8x384xf32> to vector<8x384xf32>
    %240 = vector.shape_cast %237 : vector<8x384xf32> to vector<1x8x384xf32>
    tpu.vector_store %arg3[%c0_301, %c0_302, %c0_303], %240 {strides = array<i32>} : memref<1x8x384xf32, #tpu.memory_space<vmem>>, vector<1x8x384xf32>,
    return
  }
  func.func @transform_0(%arg0: i32) -> (i32, i32, i32) {
    %c0_i32 = arith.constant 0 : i32
    %c0_i32_0 = arith.constant 0 : i32
    %c0_i32_1 = arith.constant 0 : i32
    return %arg0, %c0_i32, %c0_i32_0 : i32, i32, i32
  }
  func.func @transform_1(%arg0: i32) -> (i32, i32) {
    %c0_i32 = arith.constant 0 : i32
    %c0_i32_0 = arith.constant 0 : i32
    %c0_i32_1 = arith.constant 0 : i32
    return %c0_i32, %c0_i32_0 : i32, i32
  }
  func.func @transform_2(%arg0: i32) -> (i32, i32, i32) {
    %c0_i32 = arith.constant 0 : i32
    %c0_i32_0 = arith.constant 0 : i32
    %c0_i32_1 = arith.constant 0 : i32
    return %arg0, %c0_i32, %c0_i32_0 : i32, i32, i32
  }
}

</mosaic_0001>

<bundles_post_ra>
// kernel: tpu_custom_call.1
= control target key start
LH: loop header
LB: loop body
LE: loop exit
PB: predicated region body
PF: predicated region fallthrough
CT: control target
= control target key end

     0   :  { %7 = vsyncpa [#allocation4], 0  ;;  %s1960_s0 = inlined_call_operand.vmem [shape: f32[2,3,400], index: 0, kind: input, shape index: {}]   ;;  %s1961_s1 = inlined_call_operand.vmem [shape: f32[48,80], index: 1, kind: input, shape index: {}]   ;;  %s1962_s2 = inlined_call_operand.hbm [shape: f32[2,8,384], index: 2, kind: output, shape index: {}]  }
   0x1   :  { %9 = vsyncpa [#allocation4 + $0x1], 0  ;;  %s1428_s9 = smov 0   ;;  %s1430_s10 = smov 0  }
   0x2   :  { %s1432_s11 = smov 0   ;;  %s1434_s12 = smov 0  }
   0x3 LB: > { %s1449_s13 = sadd.s32 4294967295, %s1386_s12   ;;  %s1160_s14 = sadd.s32 4294967294, %s1386_s12   ;;  %s1386_s12 = sphi %s1434_s12, %s2021_s12   ;;  %s1382_s11 = sphi %s1432_s11, %s2020_s11   ;;  %s1378_s10 = sphi %s1430_s10, %s2019_s10   ;;  %s1374_s9 = sphi %s1428_s9, %s2018_s9  }
   0x4   : > { %s1453_s15 = sadd.s32 1, %s1386_s12   ;;  %s69_s16 = sadd.s32 1, %s1382_s11 }
   0x5   : > { %s66_s17 = ssub.s32 %s1386_s12, %s1453_s15  ;;  %p79_p0 = scmp.ne.s32.totalorder %s1382_s11, %s1378_s10 }
   0x6   : > { %p67_p1 = scmp.eq.s32.totalorder %s66_s17, 0  ;;  %p80_p2 = scmp.eq.s32.totalorder %s1449_s13, 1 }
   0x7   : > { %p85_p3 = scmp.ne.s32.totalorder %s1378_s10, %s1374_s9  ;;  %p86_p4 = scmp.eq.s32.totalorder %s1160_s14, 1 }
   0x8   : > { %s1464_s18 = scalar_select %p67_p1, %s1382_s11, %s69_s16  }
   0x9   : > { %p1466_p5 = por %p80_p2, %p79_p0  ;;  %p1470_p6 = por %p86_p4, %p85_p3 }
   0xa   : > { %p1163_p7 = scmp.ge.s32.totalorder %s1386_s12, 1  ;;  %p115_p8 = scmp.lt.s32.totalorder %s1386_s12, 3 }
   0xc   : > { %p116_p9 = pnand %p1163_p7, %p115_p8 }
   0xd   : > { %p137_p10 = scmp.lt.s32.totalorder (!%p116_p9), %s1449_s13, 1  ;;  %s1972_s26 = smov (!%p116_p9), 44  }
   0xe   : > { %119 = sbr.rel (%p116_p9) target bundleno = 518 (0x206), region = 28  ;;  %s1389_s27 = smov (!%p116_p9), 46  }
   0xf   : > { %s1974_s28 = smov (!%p116_p9), 68   ;;  %s1971_s29 = smov (!%p116_p9), 45  }
  0x10   : > { %s1965_s30 = smov (!%p116_p9), 84   ;;  %s1393_s3 = smov (!%p116_p9), 67  }
  0x11   : > { %s1394_s4 = smov (!%p116_p9), 66   ;;  %s1395_s5 = smov (!%p116_p9), 65  }
  0x12   : > { %s1396_s6 = smov (!%p116_p9), 64   ;;  %s1397_s7 = smov (!%p116_p9), 48  }
  0x13   : > { %s138_s21 = scalar_select %p137_p10, %s1449_s13, 1  ;;  %v146_v36 = vlaneseq  ;;  %vm1982_vm0 = vcmask 556032   ;;  %v1412_v42 = vmov 0.0   ;;  %vm322_vm2 = vcmask 547840   ;;  %v908_v40 = vld [vmem:[%s1961_s1 + $0x10] sm:$0xff] }
  0x14   : > { %s1398_s8 = smov 47   ;;  %s1963_s14 = smov 107   ;;  %142 = vst [vmem:[#allocation2 + $0xd8] sm:$0xf8] %v1412_v42  ;;  %vm355_vm3 = vcmask 523264   ;;  %vm1978_vm4 = vcmask 359424  }
  0x15   : > { %s1237_s22 = sshll.u32 %s138_s21, 4  ;;  %s1976_s16 = smov 105   ;;  %vm1557_vm1 = vcmp.lt.s32.totalorder %v146_v36, 316  ;;  %143 = vst [vmem:[#allocation2 + $0xe0] sm:$0xf8] %v1412_v42  ;;  %vm388_vm5 = vcmask 375808  }
  0x16   : > { %s1481_s25 = scalar_lea.vmem %s1960_s0, %s1237_s22  ;;  %s1973_s17 = smov 106   ;;  %144 = vst [vmem:[#allocation2 + $0xe8] sm:$0xf8] %v1412_v42  ;;  %vm1977_vm6 = vcmask 875520   ;;  %vm1983_vm7 = vcmask 367616   ;;  %vm1986_vm8 = vcmask 687104  }
  0x17   : > { %v1215_v0 = vld [vmem:[%s1481_s25 + $0x2] ss:$4 sm:$0xf]  ;;  %s1402_s21 = smov 104   ;;  %s1969_s22 = smov 87   ;;  %vm1980_vm9 = vcmask 850944  }
  0x18   : > { %v1213_v1 = vld [vmem:[%s1481_s25 + $0x2] ss:$4 sm:$0xf]  ;;  %898 = vrot.lane.b32.xlu1 %v1215_v0, %s1972_s26  ;;  %s1975_s23 = smov 88   ;;  %s1967_s24 = smov 86   ;;  %vm333_vm10 = vcmask 539648  }
  0x19   : > { %878 = vrot.lane.b32.xlu0 %v1213_v1, %s1389_s27  ;;  %v1206_v2 = vld [vmem:[%s1481_s25 + $0x2] ss:$4 sm:$0x7]  ;;  %v1189_v19 = vld [vmem:[%s1481_s25 + $0x1] ss:$4 sm:$0xf] }
  0x1a   : > { %808 = vrot.lane.b32.xlu2 %v1206_v2, %s1974_s28  ;;  %v1214_v3 = vld [vmem:[%s1481_s25 + $0x2] ss:$4 sm:$0xf]  ;;  %v1190_v20 = vld [vmem:[%s1481_s25 + $0x1] ss:$4 sm:$0xf] }
  0x1b   : > { %v1205_v4 = vld [vmem:[%s1481_s25 + $0x2] ss:$4 sm:$0x7]  ;;  %v1181_v26 = vld [vmem:[%s1481_s25 + $0x1] ss:$4 sm:$0x7] }
  0x1c   : > { %v1207_v5 = vld [vmem:[%s1481_s25 + $0x2] ss:$4 sm:$0x7]  ;;  %v1183_v27 = vld [vmem:[%s1481_s25 + $0x1] ss:$4 sm:$0x7] }
  0x1d   : > { %v1208_v6 = vld [vmem:[%s1481_s25 + $0x2] ss:$4 sm:$0x7]  ;;  %v1182_v28 = vld [vmem:[%s1481_s25 + $0x1] ss:$4 sm:$0x7] }
  0x1e   : > { %v1209_v7 = vld [vmem:[%s1481_s25 + $0x2] ss:$4 sm:$0x7]  ;;  %v1184_v29 = vld [vmem:[%s1481_s25 + $0x1] ss:$4 sm:$0x7] }
  0x1f   : > { %v1210_v8 = vld [vmem:[%s1481_s25 + $0x2] ss:$4 sm:$0x7]  ;;  %v1186_v30 = vld [vmem:[%s1481_s25 + $0x1] ss:$4 sm:$0xf] }
  0x20   : > { %798 = vrot.lane.b32.xlu1 %v1205_v4, %s1965_s30  ;;  %v1211_v9 = vld [vmem:[%s1481_s25 + $0x2] ss:$4 sm:$0xf]  ;;  %s1407_s30 = smov 127   ;;  %vm1984_vm11 = vcmask 531456   ;;  %vm1979_vm12 = vcmask 703488  }
  0x21   : > { %888 = vrot.lane.b32.xlu0 %v1214_v3, %s1971_s29  ;;  %v1212_v10 = vld [vmem:[%s1481_s25 + $0x2] ss:$4 sm:$0xf]  ;;  %v1185_v31 = vld [vmem:[%s1481_s25 + $0x1] ss:$4 sm:$0x7] }
  0x22   : > { %818 = vrot.lane.b32.xlu2 %v1207_v5, %s1393_s3  ;;  %v1197_v11 = vld [vmem:[%s1481_s25 + $0x2] ss:$4 sm:$0x7]  ;;  %v1187_v32 = vld [vmem:[%s1481_s25 + $0x1] ss:$4 sm:$0xf] }
  0x23   : > { %v1199_v12 = vld [vmem:[%s1481_s25 + $0x2] ss:$4 sm:$0x7]  ;;  %v1188_v33 = vld [vmem:[%s1481_s25 + $0x1] ss:$4 sm:$0xf] }
  0x24   : > { %v1198_v13 = vld [vmem:[%s1481_s25 + $0x2] ss:$4 sm:$0x7]  ;;  %v1173_v34 = vld [vmem:[%s1481_s25 + $0x1] ss:$4 sm:$0x7] }
  0x25   : > { %v1200_v14 = vld [vmem:[%s1481_s25 + $0x2] ss:$4 sm:$0x7]  ;;  %v1174_v35 = vld [vmem:[%s1481_s25 + $0x1] ss:$4 sm:$0x7] }
  0x26   : > { %v1202_v15 = vld [vmem:[%s1481_s25 + $0x2] ss:$4 sm:$0x7]  ;;  %v1175_v37 = vld [vmem:[%s1481_s25 + $0x1] ss:$4 sm:$0x7] }
  0x27   : > { %v1201_v16 = vld [vmem:[%s1481_s25 + $0x2] ss:$4 sm:$0x7]  ;;  %v1176_v38 = vld [vmem:[%s1481_s25 + $0x1] ss:$4 sm:$0x7] }
  0x28   : > { %838 = vrot.lane.b32.xlu1 %v1209_v7, %s1395_s5  ;;  %v1203_v17 = vld [vmem:[%s1481_s25 + $0x2] ss:$4 sm:$0x7]  ;;  %v1177_v44 = vld [vmem:[%s1481_s25 + $0x1] ss:$4 sm:$0x7] }
  0x29   : > { %828 = vrot.lane.b32.xlu0 %v1208_v6, %s1394_s4  ;;  %v1204_v18 = vld [vmem:[%s1481_s25 + $0x2] ss:$4 sm:$0x7]  ;;  %v1178_v45 = vld [vmem:[%s1481_s25 + $0x1] ss:$4 sm:$0x7] }
  0x2a   : > { %848 = vrot.lane.b32.xlu2 %v1210_v8, %s1396_s6  ;;  %v1192_v21 = vld [vmem:[%s1481_s25 + $0x2] ss:$4 sm:$0x7]  ;;  %v1179_v46 = vld [vmem:[%s1481_s25 + $0x1] ss:$4 sm:$0x7] }
  0x2b   : > { %v1193_v22 = vld [vmem:[%s1481_s25 + $0x2] ss:$4 sm:$0x7]  ;;  %v1180_v50 = vld [vmem:[%s1481_s25 + $0x1] ss:$4 sm:$0x7] }
  0x2c   : > { %v1194_v23 = vld [vmem:[%s1481_s25 + $0x2] ss:$4 sm:$0x7]  ;;  %v1167_v51 = vld [vmem:[%s1481_s25 + $0x1] ss:$4 sm:$0x7] }
  0x2d   : > { %v1195_v24 = vld [vmem:[%s1481_s25 + $0x2] ss:$4 sm:$0x7]  ;;  %v405_v52 = vld [vmem:[%s1481_s25] ss:$4 sm:$0xf] }
  0x2e   : > { %v1196_v25 = vld [vmem:[%s1481_s25 + $0x2] ss:$4 sm:$0x7]  ;;  %v1168_v56 = vld [vmem:[%s1481_s25 + $0x1] ss:$4 sm:$0x7] }
  0x2f   : > { %v1170_v61 = vld [vmem:[%s1481_s25 + $0x1] ss:$4 sm:$0x7]  ;;  %vm366_vm13 = vcmask 392192   ;;  %vm377_vm14 = vcmask 384000   ;;  %vm234_vm15 = vcmask 859136  }
  0x30   : > { %868 = vrot.lane.b32.xlu1 %v1212_v10, %s1398_s8  ;;  %v1169_v0 = vld [vmem:[%s1481_s25 + $0x1] ss:$4 sm:$0x7] }
  0x31   : > { %858 = vrot.lane.b32.xlu0 %v1211_v9, %s1397_s7  ;;  %v1171_v4 = vld [vmem:[%s1481_s25 + $0x1] ss:$4 sm:$0x7] }
  0x32   : > { %718 = vrot.lane.b32.xlu2 %v1197_v11, %s1963_s14  ;;  %s1406_s14 = smov 85   ;;  %v1172_v9 = vld [vmem:[%s1481_s25 + $0x1] ss:$4 sm:$0x7] }
  0x38   : > { %738 = vrot.lane.b32.xlu1 %v1199_v12, %s1976_s16  ;;  %v317_v12 = vld [vmem:[%s1481_s25] ss:$4 sm:$0x7] }
  0x39   : > { %728 = vrot.lane.b32.xlu0 %v1198_v13, %s1973_s17 }
  0x3a   : > { %748 = vrot.lane.b32.xlu2 %v1200_v14, %s1402_s21 }
  0x40   : > { %768 = vrot.lane.b32.xlu1 %v1202_v15, %s1969_s22  ;;  %s1409_s22 = smov 125  }
  0x41   : > { %758 = vrot.lane.b32.xlu0 %v1201_v16, %s1975_s23  ;;  %v328_v16 = vld [vmem:[%s1481_s25] ss:$4 sm:$0x7] }
  0x42   : > { %778 = vrot.lane.b32.xlu2 %v1203_v17, %s1967_s24  ;;  %s1408_s24 = smov 126  }
  0x48   : > { %643 = vrot.lane.b32.xlu1 %v1189_v19, %s1971_s29  ;;  %s1410_s29 = smov 124  }
  0x49   : > { %788 = vrot.lane.b32.xlu0 %v1204_v18, %s1406_s14 }
  0x4a   : > { %653 = vrot.lane.b32.xlu2 %v1190_v20, %s1972_s26  ;;  %s1411_s26 = smov 108  }
  0x50   : > { %678 = vrot.lane.b32.xlu1 %v1193_v22, %s1408_s24  ;;  %v350_v22 = vld [vmem:[%s1481_s25] ss:$4 sm:$0x7] }
  0x51   : > { %668 = vrot.lane.b32.xlu0 %v1192_v21, %s1407_s30  ;;  %v339_v21 = vld [vmem:[%s1481_s25] ss:$4 sm:$0x7] }
  0x52   : > { %688 = vrot.lane.b32.xlu2 %v1194_v23, %s1409_s22 }
  0x58   : > { %708 = vrot.lane.b32.xlu1 %v1196_v25, %s1411_s26 }
  0x59   : > { %698 = vrot.lane.b32.xlu0 %v1195_v24, %s1410_s29 }
  0x5a   : > { %563 = vrot.lane.b32.xlu2 %v1181_v26, %s1974_s28  ;;  %s1993_s28 = smov 86  }
  0x60   : > { %583 = vrot.lane.b32.xlu1 %v1183_v27, %s1394_s4 }
  0x61   : > { %573 = vrot.lane.b32.xlu0 %v1182_v28, %s1393_s3 }
  0x62   : > { %593 = vrot.lane.b32.xlu2 %v1184_v29, %s1395_s5 }
  0x68   : > { %613 = vrot.lane.b32.xlu1 %v1186_v30, %s1397_s7 }
  0x69   : > { %603 = vrot.lane.b32.xlu0 %v1185_v31, %s1396_s6  ;;  %v361_v31 = vld [vmem:[%s1481_s25] ss:$4 sm:$0xf] }
  0x6a   : > { %623 = vrot.lane.b32.xlu2 %v1187_v32, %s1398_s8 }
  0x70   : > { %483 = vrot.lane.b32.xlu1 %v1173_v34, %s1973_s17  ;;  %s1992_s17 = smov 87  }
  0x71   : > { %633 = vrot.lane.b32.xlu0 %v1188_v33, %s1389_s27 }
  0x72   : > { %493 = vrot.lane.b32.xlu2 %v1174_v35, %s1976_s16  ;;  %s1995_s16 = smov 44  }
  0x74   : > { %v809_v39 = vpop.permute.xlu2 %808 }
  0x75   : > { %v810_v41 = vrot.slane %v809_v39, 1 }
  0x77   : > { %v811_v43 = vsel %vm1982_vm0, %v809_v39, %v810_v41  ;;  %v383_v39 = vld [vmem:[%s1481_s25] ss:$4 sm:$0xf] }
  0x78   : > { %513 = vrot.lane.b32.xlu1 %v1176_v38, %s1975_s23  ;;  %814 = vst.msk [vmem:[#allocation2 + $0xc1] ss:$8 sm:$0x7] %vm1557_vm1, %v811_v43  ;;  %s1994_s23 = smov 84  }
  0x79   : > { %503 = vrot.lane.b32.xlu0 %v1175_v37, %s1402_s21  ;;  %v372_v38 = vld [vmem:[%s1481_s25] ss:$4 sm:$0xf] }
  0x7a   : > { %523 = vrot.lane.b32.xlu2 %v1177_v44, %s1992_s17  ;;  %v394_v44 = vld [vmem:[%s1481_s25] ss:$4 sm:$0xf] }
  0x7c   : > { %v819_v47 = vpop.permute.xlu2 %818 }
  0x7d   : > { %v820_v48 = vrot.slane %v819_v47, 1 }
  0x7f   : > { %v821_v49 = vsel %vm322_vm2, %v819_v47, %v820_v48 }
  0x80   : > { %543 = vrot.lane.b32.xlu1 %v1179_v46, %s1406_s14  ;;  %824 = vst.msk [vmem:[#allocation2 + $0xc2] ss:$8 sm:$0x7] %vm1557_vm1, %v821_v49  ;;  %v240_v49 = vld [vmem:[%s1481_s25] ss:$4 sm:$0x7] }
  0x81   : > { %533 = vrot.lane.b32.xlu0 %v1178_v45, %s1993_s28 }
  0x82   : > { %553 = vrot.lane.b32.xlu2 %v1180_v50, %s1994_s23 }
  0x84   : > { %v849_v53 = vpop.permute.xlu2 %848 }
  0x85   : > { %v850_v54 = vrot.slane %v849_v53, 1 }
  0x87   : > { %v851_v55 = vsel %vm355_vm3, %v849_v53, %v850_v54 }
  0x88   : > { %423 = vrot.lane.b32.xlu1 %v1167_v51, %s1407_s30  ;;  %854 = vst.msk [vmem:[#allocation2 + $0xc5] ss:$8 sm:$0x7] %vm1557_vm1, %v851_v55 }
  0x89   : > { %407 = vrot.lane.b32.xlu0 %v405_v52, %s1995_s16  ;;  %s1996_s16 = smov 107   ;;  %v229_v52 = vld [vmem:[%s1481_s25] ss:$4 sm:$0x7] }
  0x8a   : > { %v899_v57 = vpop.permute.xlu1 %898  ;;  %433 = vrot.lane.b32.xlu2 %v1168_v56, %s1408_s24 }
  0x8b   : > { %v879_v58 = vpop.permute.xlu0 %878  ;;  %v900_v59 = vrot.slane %v899_v57, 1 }
  0x8c   : > { %v880_v60 = vrot.slane %v879_v58, 1  ;;  %v719_v1 = vpop.permute.xlu2 %718 }
  0x8d   : > { %v901_v62 = vsel %vm1978_vm4, %v899_v57, %v900_v59  ;;  %v720_v2 = vrot.slane %v719_v1, 1 }
  0x8e   : > { %v881_v63 = vsel %vm388_vm5, %v879_v58, %v880_v60  ;;  %904 = vst.msk [vmem:[#allocation2 + $0xda] ss:$8 sm:$0x7] %vm1557_vm1, %v901_v62  ;;  %v251_v58 = vld [vmem:[%s1481_s25] ss:$4 sm:$0x7] }
  0x8f   : > { %884 = vst.msk [vmem:[#allocation2 + $0xd8] ss:$8 sm:$0x7] %vm1557_vm1, %v881_v63  ;;  %v721_v3 = vsel %vm1977_vm6, %v719_v1, %v720_v2  ;;  %vm223_vm6 = vcmask 867328  }
  0x90   : > { %453 = vrot.lane.b32.xlu1 %v1170_v61, %s1410_s29  ;;  %724 = vst.msk [vmem:[#allocation2 + $0xa8] ss:$8 sm:$0x7] %vm1557_vm1, %v721_v3  ;;  %v1191_v60 = vld [vmem:[%s1481_s25 + $0x2] ss:$4 sm:$0x7] }
  0x91   : > { %443 = vrot.lane.b32.xlu0 %v1169_v0, %s1409_s22  ;;  %664 = vst.msk [vmem:[#allocation2 + $0x92] ss:$8 sm:$0x7] %vm1557_vm1, %v1191_v60  ;;  %v273_v3 = vld [vmem:[%s1481_s25] ss:$4 sm:$0x7] }
  0x92   : > { %v799_v6 = vpop.permute.xlu1 %798  ;;  %463 = vrot.lane.b32.xlu2 %v1171_v4, %s1411_s26  ;;  %v262_v4 = vld [vmem:[%s1481_s25] ss:$4 sm:$0x7] }
  0x93   : > { %v889_v5 = vpop.permute.xlu0 %888  ;;  %v800_v8 = vrot.slane %v799_v6, 1 }
  0x94   : > { %v890_v7 = vrot.slane %v889_v5, 1  ;;  %v749_v13 = vpop.permute.xlu2 %748 }
  0x95   : > { %v801_v11 = vsel %vm1986_vm8, %v799_v6, %v800_v8  ;;  %v750_v14 = vrot.slane %v749_v13, 1  ;;  %v284_v8 = vld [vmem:[%s1481_s25] ss:$4 sm:$0x7] }
  0x96   : > { %v891_v10 = vsel %vm1983_vm7, %v889_v5, %v890_v7  ;;  %804 = vst.msk [vmem:[#allocation2 + $0xc0] ss:$8 sm:$0x7] %vm1557_vm1, %v801_v11 }
  0x97   : > { %894 = vst.msk [vmem:[#allocation2 + $0xd9] ss:$8 sm:$0x7] %vm1557_vm1, %v891_v10  ;;  %v751_v15 = vsel %vm1980_vm9, %v749_v13, %v750_v14  ;;  %vm256_vm9 = vcmask 719872  }
  0x98   : > { %319 = vrot.lane.b32.xlu1 %v317_v12, %s1393_s3  ;;  %754 = vst.msk [vmem:[#allocation2 + $0xab] ss:$8 sm:$0x7] %vm1557_vm1, %v751_v15  ;;  %s1997_s3 = smov 45  }
  0x99   : > { %473 = vrot.lane.b32.xlu0 %v1172_v9, %s1996_s16  ;;  %v306_v15 = vld [vmem:[%s1481_s25] ss:$4 sm:$0x7] }
  0x9a   : > { %v839_v18 = vpop.permute.xlu1 %838  ;;  %330 = vrot.lane.b32.xlu2 %v328_v16, %s1394_s4  ;;  %s1999_s4 = smov 88   ;;  %v295_v16 = vld [vmem:[%s1481_s25] ss:$4 sm:$0x7] }
  0x9b   : > { %v829_v17 = vpop.permute.xlu0 %828  ;;  %v840_v20 = vrot.slane %v839_v18, 1 }
  0x9c   : > { %v830_v19 = vrot.slane %v829_v17, 1  ;;  %v779_v28 = vpop.permute.xlu2 %778 }
  0x9d   : > { %v841_v24 = vsel %vm1984_vm11, %v839_v18, %v840_v20  ;;  %v780_v29 = vrot.slane %v779_v28, 1  ;;  %v152_v20 = vld [vmem:[%s1481_s25] ss:$4 sm:$0x7] }
  0x9e   : > { %v831_v23 = vsel %vm333_vm10, %v829_v17, %v830_v19  ;;  %v939_v25 = vld [vmem:[#allocation2 + $0xd8] sm:$0xff]  ;;  %v1620_v26 = vld [vmem:[#allocation2 + $0xe0] sm:$0xff]  ;;  %v941_v27 = vld [vmem:[#allocation2 + $0xe8] sm:$0xff]  ;;  %844 = vst.msk [vmem:[#allocation2 + $0xc4] ss:$8 sm:$0x7] %vm1557_vm1, %v841_v24 }
  0x9f   : > { %834 = vst.msk [vmem:[#allocation2 + $0xc3] ss:$8 sm:$0x7] %vm1557_vm1, %v831_v23  ;;  %967 = vmatpush.msra.mxu0 %v939_v25  ;;  %1238 = vmatpush.msra.mxu3 %v939_v25  ;;  %v781_v30 = vsel %vm1979_vm12, %v779_v28, %v780_v29  ;;  %vm267_vm12 = vcmask 711680  }
  0xa0   : > { %1248 = vmatpush.msra.mxu1 %v1620_v26  ;;  %1037 = vmatpush.msra.mxu2 %v941_v27  ;;  %784 = vst.msk [vmem:[#allocation2 + $0xae] ss:$8 sm:$0x7] %vm1557_vm1, %v781_v30  ;;  %v174_v25 = vld [vmem:[%s1481_s25] ss:$4 sm:$0x7] }
  0xa1   : > { %341 = vrot.lane.b32.xlu0 %v339_v21, %s1395_s5  ;;  %352 = vrot.lane.b32.xlu1 %v350_v22, %s1396_s6  ;;  %v163_v27 = vld [vmem:[%s1481_s25] ss:$4 sm:$0x7] }
  0xa2   : > { %v869_v33 = vpop.permute.xlu1 %868  ;;  %363 = vrot.lane.b32.xlu2 %v361_v31, %s1397_s7 }
  0xa3   : > { %v859_v32 = vpop.permute.xlu0 %858  ;;  %v870_v35 = vrot.slane %v869_v33, 1 }
  0xa4   : > { %v860_v34 = vrot.slane %v859_v32, 1  ;;  %v654_v41 = vpop.permute.xlu2 %653 }
  0xa5   : > { %v871_v37 = vsel %vm377_vm14, %v869_v33, %v870_v35  ;;  %v655_v42 = vrot.slane %v654_v41, 1 }
  0xa6   : > { %v861_v36 = vsel %vm366_vm13, %v859_v32, %v860_v34  ;;  %874 = vst.msk [vmem:[#allocation2 + $0xc7] ss:$8 sm:$0x7] %vm1557_vm1, %v871_v37 }
  0xa7   : > { %864 = vst.msk [vmem:[#allocation2 + $0xc6] ss:$8 sm:$0x7] %vm1557_vm1, %v861_v36  ;;  %v656_v43 = vsel %vm1978_vm4, %v654_v41, %v655_v42  ;;  %vm1981_vm4 = vcmask 1022976  }
  0xa8   : > { %659 = vst.msk [vmem:[#allocation2 + $0x91] ss:$8 sm:$0x7] %vm1557_vm1, %v656_v43  ;;  %v185_v36 = vld [vmem:[%s1481_s25] ss:$4 sm:$0x7] }
  0xa9   : > { %374 = vrot.lane.b32.xlu0 %v372_v38, %s1398_s8  ;;  %385 = vrot.lane.b32.xlu1 %v383_v39, %s1389_s27  ;;  %s1998_s27 = smov 105   ;;  %s1344_s8 = scalar_lea.hbm %s1962_s2, 48 }
  0xaa   : > { %v739_v45 = vpop.permute.xlu1 %738  ;;  %396 = vrot.lane.b32.xlu2 %v394_v44, %s1997_s3  ;;  %v207_v44 = vld [vmem:[%s1481_s25] ss:$4 sm:$0x7] }
  0xab   : > { %v729_v46 = vpop.permute.xlu0 %728  ;;  %v740_v47 = vrot.slane %v739_v45, 1 }
  0xac   : > { %v730_v48 = vrot.slane %v729_v46, 1  ;;  %v689_v53 = vpop.permute.xlu2 %688 }
  0xad   : > { %v741_v50 = vsel %vm234_vm15, %v739_v45, %v740_v47  ;;  %v690_v57 = vrot.slane %v689_v53, 1  ;;  %v196_v45 = vld [vmem:[%s1481_s25] ss:$4 sm:$0x7] }
  0xae   : > { %v731_v51 = vsel %vm223_vm6, %v729_v46, %v730_v48  ;;  %744 = vst.msk [vmem:[#allocation2 + $0xaa] ss:$8 sm:$0x7] %vm1557_vm1, %v741_v50  ;;  %v936_v54 = vld [vmem:[#allocation2 + $0xc0] sm:$0xff]  ;;  %v1655_v55 = vld [vmem:[#allocation2 + $0xc8] sm:$0xff]  ;;  %v938_v56 = vld [vmem:[#allocation2 + $0xd0] sm:$0xff] }
  0xaf   : > { %734 = vst.msk [vmem:[#allocation2 + $0xa9] ss:$8 sm:$0x7] %vm1557_vm1, %v731_v51  ;;  %968 = vmatpush.msra.mxu0 %v936_v54  ;;  %1239 = vmatpush.msra.mxu3 %v936_v54  ;;  %v691_v59 = vsel %vm1981_vm4, %v689_v53, %v690_v57  ;;  %vm289_vm4 = vcmask 695296  }
  0xb0   : > { %1249 = vmatpush.msra.mxu1 %v1655_v55  ;;  %1038 = vmatpush.msra.mxu2 %v938_v56  ;;  %694 = vst.msk [vmem:[#allocation2 + $0x95] ss:$8 sm:$0x7] %vm1557_vm1, %v691_v59 }
  0xb1   : > { %242 = vrot.lane.b32.xlu1 %v240_v49, %s1402_s21  ;;  %231 = vrot.lane.b32.xlu0 %v229_v52, %s1998_s27  ;;  %v218_v49 = vld [vmem:[%s1481_s25] ss:$4 sm:$0x7]  ;;  %s1259_s27 = smul.u32 24, %s1449_s13 }
  0xb2   : > { %v769_v61 = vpop.permute.xlu1 %768  ;;  %253 = vrot.lane.b32.xlu2 %v251_v58, %s1999_s4 }
  0xb3   : > { %v759_v62 = vpop.permute.xlu0 %758  ;;  %v770_v63 = vrot.slane %v769_v61, 1 }
  0xb4   : > { %v760_v0 = vrot.slane %v759_v62, 1  ;;  %v564_v5 = vpop.permute.xlu2 %563 }
  0xb5   : > { %v771_v1 = vsel %vm267_vm12, %v769_v61, %v770_v63  ;;  %v565_v6 = vrot.slane %v564_v5, 1 }
  0xb6   : > { %v761_v2 = vsel %vm256_vm9, %v759_v62, %v760_v0  ;;  %774 = vst.msk [vmem:[#allocation2 + $0xad] ss:$8 sm:$0x7] %vm1557_vm1, %v771_v1 }
  0xb7   : > { %764 = vst.msk [vmem:[#allocation2 + $0xac] ss:$8 sm:$0x7] %vm1557_vm1, %v761_v2  ;;  %v566_v7 = vsel %vm1982_vm0, %v564_v5, %v565_v6  ;;  %vm1985_vm0 = vcmask 1039360  }
  0xb8   : > { %569 = vst.msk [vmem:[#allocation2 + $0x78] ss:$8 sm:$0x7] %vm1557_vm1, %v566_v7 }
  0xb9   : > { %275 = vrot.lane.b32.xlu1 %v273_v3, %s1993_s28  ;;  %264 = vrot.lane.b32.xlu0 %v262_v4, %s1992_s17  ;;  %s2000_s28 = smov 68  }
  0xba   : > { %v644_v10 = vpop.permute.xlu1 %643  ;;  %286 = vrot.lane.b32.xlu2 %v284_v8, %s1406_s14 }
  0xbb   : > { %v789_v9 = vpop.permute.xlu0 %788  ;;  %v645_v12 = vrot.slane %v644_v10, 1 }
  0xbc   : > { %v790_v11 = vrot.slane %v789_v9, 1  ;;  %v594_v17 = vpop.permute.xlu2 %593 }
  0xbd   : > { %v646_v14 = vsel %vm1983_vm7, %v644_v10, %v645_v12  ;;  %v595_v18 = vrot.slane %v594_v17, 1  ;;  %vm168_vm7 = vcmask 1031168  }
  0xbe   : > { %v791_v13 = vsel %vm289_vm4, %v789_v9, %v790_v11  ;;  %649 = vst.msk [vmem:[#allocation2 + $0x90] ss:$8 sm:$0x7] %vm1557_vm1, %v646_v14 }
  0xbf   : > { %794 = vst.msk [vmem:[#allocation2 + $0xaf] ss:$8 sm:$0x7] %vm1557_vm1, %v791_v13  ;;  %v596_v19 = vsel %vm1984_vm11, %v594_v17, %v595_v18  ;;  %vm190_vm11 = vcmask 1014784  }
  0xc0   : > { %599 = vst.msk [vmem:[#allocation2 + $0x7b] ss:$8 sm:$0x7] %vm1557_vm1, %v596_v19 }
  0xc1   : > { %308 = vrot.lane.b32.xlu1 %v306_v15, %s2000_s28  ;;  %297 = vrot.lane.b32.xlu0 %v295_v16, %s1994_s23 }
  0xc2   : > { %v679_v22 = vpop.permute.xlu1 %678  ;;  %154 = vrot.lane.b32.xlu2 %v152_v20, %s1407_s30 }
  0xc3   : > { %v669_v21 = vpop.permute.xlu0 %668  ;;  %v680_v24 = vrot.slane %v679_v22, 1 }
  0xc4   : > { %v670_v23 = vrot.slane %v669_v21, 1  ;;  %v624_v33 = vpop.permute.xlu2 %623 }
  0xc5   : > { %v681_v29 = vsel %vm168_vm7, %v679_v22, %v680_v24  ;;  %v625_v34 = vrot.slane %v624_v33, 1 }
  0xc6   : > { %v671_v28 = vsel %vm1985_vm0, %v669_v21, %v670_v23  ;;  %v933_v30 = vld [vmem:[#allocation2 + $0xa8] sm:$0xff]  ;;  %v1704_v31 = vld [vmem:[#allocation2 + $0xb0] sm:$0xff]  ;;  %v935_v32 = vld [vmem:[#allocation2 + $0xb8] sm:$0xff]  ;;  %684 = vst.msk [vmem:[#allocation2 + $0x94] ss:$8 sm:$0x7] %vm1557_vm1, %v681_v29 }
  0xc7   : > { %674 = vst.msk [vmem:[#allocation2 + $0x93] ss:$8 sm:$0x7] %vm1557_vm1, %v671_v28  ;;  %969 = vmatpush.msra.mxu0 %v933_v30  ;;  %1240 = vmatpush.msra.mxu3 %v933_v30  ;;  %v626_v35 = vsel %vm377_vm14, %v624_v33, %v625_v34  ;;  %vm1987_vm0 = vcmask 883712  }
  0xc8   : > { %1250 = vmatpush.msra.mxu1 %v1704_v31  ;;  %1039 = vmatpush.msra.mxu2 %v935_v32  ;;  %629 = vst.msk [vmem:[#allocation2 + $0x7e] ss:$8 sm:$0x7] %vm1557_vm1, %v626_v35  ;;  %v1166_v29 = vld [vmem:[%s1481_s25 + $0x1] ss:$4 sm:$0x7] }
  0xc9   : > { %176 = vrot.lane.b32.xlu1 %v174_v25, %s1409_s22  ;;  %165 = vrot.lane.b32.xlu0 %v163_v27, %s1408_s24  ;;  %419 = vst.msk [vmem:[#allocation2 + $0x49] ss:$8 sm:$0x7] %vm1557_vm1, %v1166_v29  ;;  %s134_s24 = sand.u32 1, %s1378_s10  }
  0xca   : > { %v709_v38 = vpop.permute.xlu1 %708  ;;  %187 = vrot.lane.b32.xlu2 %v185_v36, %s1410_s29  ;;  %s2001_s29 = smov 106   ;;  %s1085_s13 = scalar_lea.sflag [#allocation4], %s134_s24 }
  0xcb   : > { %v699_v37 = vpop.permute.xlu0 %698  ;;  %v710_v41 = vrot.slane %v709_v38, 1 }
  0xcc   : > { %v700_v39 = vrot.slane %v699_v37, 1  ;;  %v494_v46 = vpop.permute.xlu2 %493 }
  0xcd   : > { %v711_v43 = vsel %vm1987_vm0, %v709_v38, %v710_v41  ;;  %v495_v47 = vrot.slane %v494_v46, 1 }
  0xce   : > { %v701_v42 = vsel %vm190_vm11, %v699_v37, %v700_v39  ;;  %714 = vst.msk [vmem:[#allocation2 + $0x97] ss:$8 sm:$0x7] %vm1557_vm1, %v711_v43 }
  0xcf   : > { %704 = vst.msk [vmem:[#allocation2 + $0x96] ss:$8 sm:$0x7] %vm1557_vm1, %v701_v42  ;;  %v496_v48 = vsel %vm234_vm15, %v494_v46, %v495_v47 }
  0xd0   : > { %499 = vst.msk [vmem:[#allocation2 + $0x61] ss:$8 sm:$0x7] %vm1557_vm1, %v496_v48 }
  0xd1   : > { %209 = vrot.lane.b32.xlu1 %v207_v44, %s1996_s16  ;;  %198 = vrot.lane.b32.xlu0 %v196_v45, %s1411_s26  ;;  %s1258_s16 = smul.u32 24, %s134_s24 }
  0xd2   : > { %v584_v50 = vpop.permute.xlu1 %583  ;;  %220 = vrot.lane.b32.xlu2 %v218_v49, %s2001_s29  ;;  %s1096_s29 = scalar_lea.hbm %s1962_s2, %s1259_s27 }
  0xd3   : > { %v574_v51 = vpop.permute.xlu0 %573  ;;  %v585_v52 = vrot.slane %v584_v50, 1  ;;  %s136_s3 = scalar_lea.vmem [#allocation3], %s1258_s16  ;;  %s1100_s26 = sshll.u32 %s1096_s29, 4  ;;  %s1101_s26 = int_to_ptr.hbm [resolvable:$true] %s1100_s26 }
  0xd4   : > { %v575_v53 = vrot.slane %v574_v51, 1  ;;  %v524_v57 = vpop.permute.xlu2 %523  ;;  %s1338_s30 = sshra.s32 %s1101_s26, 4  ;;  %s1339_s30 = int_to_ptr.hbm [resolvable:$true] %s1338_s30 }
  0xd5   : > { %v586_v54 = vsel %vm333_vm10, %v584_v50, %v585_v52  ;;  %v525_v61 = vrot.slane %v524_v57, 1  ;;  %s1340_s5 = scalar_lea.hbm %s1339_s30, 24  ;;  %p1345_p0 = scmp.lt.s32.totalorder %s1339_s30, %s1962_s2 }
  0xd6   : > { %v576_v56 = vsel %vm322_vm2, %v574_v51, %v575_v53  ;;  %589 = vst.msk [vmem:[#allocation2 + $0x7a] ss:$8 sm:$0x7] %vm1557_vm1, %v586_v54  ;;  %v930_v58 = vld [vmem:[#allocation2 + $0x90] sm:$0xff]  ;;  %v1737_v59 = vld [vmem:[#allocation2 + $0x98] sm:$0xff]  ;;  %v932_v60 = vld [vmem:[#allocation2 + $0xa0] sm:$0xff]  ;;  %p1341_p11 = scmp.ne.s32.totalorder %s1339_s30, %s1340_s5  ;;  %p1346_p1 = scmp.lt.s32.totalorder %s1344_s8, %s1340_s5 }
  0xd7   : > { %579 = vst.msk [vmem:[#allocation2 + $0x79] ss:$8 sm:$0x7] %vm1557_vm1, %v576_v56  ;;  %970 = vmatpush.msra.mxu0 %v930_v58  ;;  %1241 = vmatpush.msra.mxu3 %v930_v58  ;;  %v526_v62 = vsel %vm267_vm12, %v524_v57, %v525_v61 }
  0xd8   : > { %1251 = vmatpush.msra.mxu1 %v1737_v59  ;;  %1040 = vmatpush.msra.mxu2 %v932_v60  ;;  %529 = vst.msk [vmem:[#allocation2 + $0x64] ss:$8 sm:$0x7] %vm1557_vm1, %v526_v62  ;;  %p1342_p12 = pnand %p1341_p11, %p1466_p5  ;;  %p1347_p2 = por %p1346_p1, %p1345_p0 }
  0xda   : > { %v614_v63 = vpop.permute.xlu1 %613  ;;  %p1343_p13 = pneg %p1342_p12 }
  0xdb   : > { %v604_v0 = vpop.permute.xlu0 %603  ;;  %v615_v1 = vrot.slane %v614_v63, 1 }
  0xdc   : > { %v605_v2 = vrot.slane %v604_v0, 1  ;;  %v554_v5 = vpop.permute.xlu2 %553  ;;  %p1348_p3 = pnand %p1347_p2, %p1343_p13 }
  0xdd   : > { %v616_v3 = vsel %vm366_vm13, %v614_v63, %v615_v1  ;;  %v555_v6 = vrot.slane %v554_v5, 1 }
  0xde   : > { %v606_v4 = vsel %vm355_vm3, %v604_v0, %v605_v2  ;;  %619 = vst.msk [vmem:[#allocation2 + $0x7d] ss:$8 sm:$0x7] %vm1557_vm1, %v616_v3 }
  0xdf   : > { %609 = vst.msk [vmem:[#allocation2 + $0x7c] ss:$8 sm:$0x7] %vm1557_vm1, %v606_v4  ;;  %v556_v7 = vsel %vm1986_vm8, %v554_v5, %v555_v6  ;;  %vm2002_vm8 = vcmask 850944  }
  0xe0   : > { %559 = vst.msk [vmem:[#allocation2 + $0x67] ss:$8 sm:$0x7] %vm1557_vm1, %v556_v7 }
  0xe2   : > { %v484_v9 = vpop.permute.xlu1 %483 }
  0xe3   : > { %v634_v8 = vpop.permute.xlu0 %633  ;;  %v485_v11 = vrot.slane %v484_v9, 1 }
  0xe4   : > { %v635_v10 = vrot.slane %v634_v8, 1  ;;  %v434_v14 = vpop.permute.xlu2 %433 }
  0xe5   : > { %v486_v13 = vsel %vm223_vm6, %v484_v9, %v485_v11  ;;  %v435_v15 = vrot.slane %v434_v14, 1 }
  0xe6   : > { %v636_v12 = vsel %vm388_vm5, %v634_v8, %v635_v10  ;;  %489 = vst.msk [vmem:[#allocation2 + $0x60] ss:$8 sm:$0x7] %vm1557_vm1, %v486_v13 }
  0xe7   : > { %639 = vst.msk [vmem:[#allocation2 + $0x7f] ss:$8 sm:$0x7] %vm1557_vm1, %v636_v12  ;;  %v436_v16 = vsel %vm168_vm7, %v434_v14, %v435_v15 }
  0xe8   : > { %439 = vst.msk [vmem:[#allocation2 + $0x4b] ss:$8 sm:$0x7] %vm1557_vm1, %v436_v16 }
  0xea   : > { %v514_v18 = vpop.permute.xlu1 %513 }
  0xeb   : > { %v504_v17 = vpop.permute.xlu0 %503  ;;  %v515_v20 = vrot.slane %v514_v18, 1 }
  0xec   : > { %v505_v19 = vrot.slane %v504_v17, 1  ;;  %v464_v27 = vpop.permute.xlu2 %463 }
  0xed   : > { %v516_v22 = vsel %vm256_vm9, %v514_v18, %v515_v20  ;;  %v465_v28 = vrot.slane %v464_v27, 1 }
  0xee   : > { %v506_v21 = vsel %vm2002_vm8, %v504_v17, %v505_v19  ;;  %v927_v23 = vld [vmem:[#allocation2 + $0x78] sm:$0xff]  ;;  %v1765_v24 = vld [vmem:[#allocation2 + $0x80] sm:$0xff]  ;;  %v929_v25 = vld [vmem:[#allocation2 + $0x88] sm:$0xff]  ;;  %519 = vst.msk [vmem:[#allocation2 + $0x63] ss:$8 sm:$0x7] %vm1557_vm1, %v516_v22 }
  0xef   : > { %509 = vst.msk [vmem:[#allocation2 + $0x62] ss:$8 sm:$0x7] %vm1557_vm1, %v506_v21  ;;  %971 = vmatpush.msra.mxu0 %v927_v23  ;;  %1242 = vmatpush.msra.mxu3 %v927_v23  ;;  %v466_v30 = vsel %vm1987_vm0, %v464_v27, %v465_v28  ;;  %vm2003_vm8 = vcmask 703488   ;;  %vm2005_vm0 = vcmask 359424  }
  0xf0   : > { %1252 = vmatpush.msra.mxu1 %v1765_v24  ;;  %1041 = vmatpush.msra.mxu2 %v929_v25  ;;  %469 = vst.msk [vmem:[#allocation2 + $0x4e] ss:$8 sm:$0x7] %vm1557_vm1, %v466_v30 }
  0xf2   : > { %v544_v33 = vpop.permute.xlu1 %543 }
  0xf3   : > { %v534_v32 = vpop.permute.xlu0 %533  ;;  %v545_v35 = vrot.slane %v544_v33, 1 }
  0xf4   : > { %v535_v34 = vrot.slane %v534_v32, 1  ;;  %v331_v38 = vpop.permute.xlu2 %330 }
  0xf5   : > { %v546_v37 = vsel %vm289_vm4, %v544_v33, %v545_v35  ;;  %v332_v39 = vrot.slane %v331_v38, 1 }
  0xf6   : > { %v536_v36 = vsel %vm2003_vm8, %v534_v32, %v535_v34  ;;  %549 = vst.msk [vmem:[#allocation2 + $0x66] ss:$8 sm:$0x7] %vm1557_vm1, %v546_v37  ;;  %vm2004_vm8 = vcmask 1039360  }
  0xf7   : > { %539 = vst.msk [vmem:[#allocation2 + $0x65] ss:$8 sm:$0x7] %vm1557_vm1, %v536_v36  ;;  %v334_v41 = vsel %vm333_vm10, %v331_v38, %v332_v39  ;;  %vm2007_vm10 = vcmask 367616  }
  0xf8   : > { %337 = vst.msk [vmem:[#allocation2 + $0x31] ss:$8 sm:$0x7] %vm1557_vm1, %v334_v41 }
  0xfa   : > { %v424_v42 = vpop.permute.xlu1 %423 }
  0xfb   : > { %v408_v43 = vpop.permute.xlu0 %407  ;;  %v425_v44 = vrot.slane %v424_v42, 1 }
  0xfc   : > { %v409_v45 = vrot.slane %v408_v43, 1  ;;  %v364_v48 = vpop.permute.xlu2 %363 }
  0xfd   : > { %v426_v46 = vsel %vm2004_vm8, %v424_v42, %v425_v44  ;;  %v365_v52 = vrot.slane %v364_v48, 1  ;;  %vm2009_vm8 = vcmask 531456  }
  0xfe   : > { %v411_v47 = vsel %vm2005_vm0, %v408_v43, %v409_v45  ;;  %429 = vst.msk [vmem:[#allocation2 + $0x4a] ss:$8 sm:$0x7] %vm1557_vm1, %v426_v46  ;;  %v924_v49 = vld [vmem:[#allocation2 + $0x60] sm:$0xff]  ;;  %v1791_v50 = vld [vmem:[#allocation2 + $0x68] sm:$0xff]  ;;  %v926_v51 = vld [vmem:[#allocation2 + $0x70] sm:$0xff] }
  0xff   : > { %414 = vst.msk [vmem:[#allocation2 + $0x48] ss:$8 sm:$0x7] %vm1557_vm1, %v411_v47  ;;  %972 = vmatpush.msra.mxu0 %v924_v49  ;;  %1243 = vmatpush.msra.mxu3 %v924_v49  ;;  %v367_v53 = vsel %vm366_vm13, %v364_v48, %v365_v52  ;;  %vm2006_vm0 = vcmask 1022976   ;;  %vm2008_vm13 = vcmask 875520  }
 0x100   : > { %1253 = vmatpush.msra.mxu1 %v1791_v50  ;;  %1042 = vmatpush.msra.mxu2 %v926_v51  ;;  %370 = vst.msk [vmem:[#allocation2 + $0x34] ss:$8 sm:$0x7] %vm1557_vm1, %v367_v53  ;;  %v145_v47 = vld [vmem:[%s1481_s25] ss:$4 sm:$0x7] }
 0x101   : > { %150 = vst.msk [vmem:[#allocation2] ss:$8 sm:$0x7] %vm1557_vm1, %v145_v47  ;;  %s1098_s25 = sshll.u32 %s136_s3, 4  ;;  %s1099_s25 = int_to_ptr.vmem [resolvable:$true] %s1098_s25 }
 0x102   : > { %v454_v54 = vpop.permute.xlu1 %453 }
 0x103   : > { %v444_v56 = vpop.permute.xlu0 %443  ;;  %v455_v57 = vrot.slane %v454_v54, 1 }
 0x104   : > { %v445_v58 = vrot.slane %v444_v56, 1  ;;  %v397_v62 = vpop.permute.xlu2 %396 }
 0x105   : > { %v456_v60 = vsel %vm190_vm11, %v454_v54, %v455_v57  ;;  %v398_v63 = vrot.slane %v397_v62, 1 }
 0x106   : > { %v446_v61 = vsel %vm2006_vm0, %v444_v56, %v445_v58  ;;  %459 = vst.msk [vmem:[#allocation2 + $0x4d] ss:$8 sm:$0x7] %vm1557_vm1, %v456_v60 }
 0x107   : > { %449 = vst.msk [vmem:[#allocation2 + $0x4c] ss:$8 sm:$0x7] %vm1557_vm1, %v446_v61  ;;  %v400_v0 = vsel %vm2007_vm10, %v397_v62, %v398_v63 }
 0x108   : > { %403 = vst.msk [vmem:[#allocation2 + $0x37] ss:$8 sm:$0x7] %vm1557_vm1, %v400_v0 }
 0x10a   : > { %v320_v2 = vpop.permute.xlu1 %319 }
 0x10b   : > { %v474_v1 = vpop.permute.xlu0 %473  ;;  %v321_v4 = vrot.slane %v320_v2, 1 }
 0x10c   : > { %v475_v3 = vrot.slane %v474_v1, 1  ;;  %v254_v7 = vpop.permute.xlu2 %253 }
 0x10d   : > { %v323_v6 = vsel %vm322_vm2, %v320_v2, %v321_v4  ;;  %v255_v8 = vrot.slane %v254_v7, 1  ;;  %vm2010_vm2 = vcmask 1039360  }
 0x10e   : > { %v476_v5 = vsel %vm2008_vm13, %v474_v1, %v475_v3  ;;  %326 = vst.msk [vmem:[#allocation2 + $0x30] ss:$8 sm:$0x7] %vm1557_vm1, %v323_v6 }
 0x10f   : > { %479 = vst.msk [vmem:[#allocation2 + $0x4f] ss:$8 sm:$0x7] %vm1557_vm1, %v476_v5  ;;  %v257_v9 = vsel %vm256_vm9, %v254_v7, %v255_v8  ;;  %vm2014_vm9 = vcmask 687104  }
 0x110   : > { %260 = vst.msk [vmem:[#allocation2 + $0x1a] ss:$8 sm:$0x7] %vm1557_vm1, %v257_v9 }
 0x113   : > { %v342_v10 = vpop.permute.xlu0 %341  ;;  %v353_v11 = vpop.permute.xlu1 %352 }
 0x114   : > { %v343_v12 = vrot.slane %v342_v10, 1  ;;  %v354_v13 = vrot.slane %v353_v11, 1  ;;  %v287_v19 = vpop.permute.xlu2 %286 }
 0x115   : > { %v288_v20 = vrot.slane %v287_v19, 1 }
 0x116   : > { %v345_v14 = vsel %vm2009_vm8, %v342_v10, %v343_v12  ;;  %v356_v15 = vsel %vm355_vm3, %v353_v11, %v354_v13  ;;  %v921_v16 = vld [vmem:[#allocation2 + $0x48] sm:$0xff]  ;;  %v1819_v17 = vld [vmem:[#allocation2 + $0x50] sm:$0xff]  ;;  %v923_v18 = vld [vmem:[#allocation2 + $0x58] sm:$0xff]  ;;  %vm2011_vm3 = vcmask 850944  }
 0x117   : > { %348 = vst.msk [vmem:[#allocation2 + $0x32] ss:$8 sm:$0x7] %vm1557_vm1, %v345_v14  ;;  %973 = vmatpush.msra.mxu0 %v921_v16  ;;  %1244 = vmatpush.msra.mxu3 %v921_v16  ;;  %v290_v21 = vsel %vm289_vm4, %v287_v19, %v288_v20  ;;  %vm2012_vm4 = vcmask 703488  }
 0x118   : > { %359 = vst.msk [vmem:[#allocation2 + $0x33] ss:$8 sm:$0x7] %vm1557_vm1, %v356_v15  ;;  %1254 = vmatpush.msra.mxu1 %v1819_v17  ;;  %1043 = vmatpush.msra.mxu2 %v923_v18  ;;  %v907_v18 = vld [vmem:[%s1961_s1 + $0x8] sm:$0xff] }
 0x119   : > { %293 = vst.msk [vmem:[#allocation2 + $0x1d] ss:$8 sm:$0x7] %vm1557_vm1, %v290_v21 }
 0x11b   : > { %v375_v22 = vpop.permute.xlu0 %374  ;;  %v386_v23 = vpop.permute.xlu1 %385 }
 0x11c   : > { %v376_v25 = vrot.slane %v375_v22, 1  ;;  %v387_v27 = vrot.slane %v386_v23, 1  ;;  %v155_v30 = vpop.permute.xlu2 %154 }
 0x11d   : > { %v156_v32 = vrot.slane %v155_v30, 1 }
 0x11e   : > { %v378_v28 = vsel %vm377_vm14, %v375_v22, %v376_v25  ;;  %v389_v29 = vsel %vm388_vm5, %v386_v23, %v387_v27  ;;  %vm2013_vm5 = vcmask 556032   ;;  %v906_v22 = vld [vmem:[%s1961_s1] sm:$0xff] }
 0x11f   : > { %381 = vst.msk [vmem:[#allocation2 + $0x35] ss:$8 sm:$0x7] %vm1557_vm1, %v378_v28  ;;  %v158_v33 = vsel %vm2010_vm2, %v155_v30, %v156_v32 }
 0x120   : > { %392 = vst.msk [vmem:[#allocation2 + $0x36] ss:$8 sm:$0x7] %vm1557_vm1, %v389_v29 }
 0x121   : > { %161 = vst.msk [vmem:[#allocation2 + $0x1] ss:$8 sm:$0x7] %vm1557_vm1, %v158_v33 }
 0x123   : > { %v243_v34 = vpop.permute.xlu1 %242  ;;  %v232_v35 = vpop.permute.xlu0 %231 }
 0x124   : > { %v244_v36 = vrot.slane %v243_v34, 1  ;;  %v233_v37 = vrot.slane %v232_v35, 1  ;;  %v188_v38 = vpop.permute.xlu2 %187 }
 0x125   : > { %v189_v45 = vrot.slane %v188_v38, 1 }
 0x126   : > { %v246_v39 = vsel %vm2011_vm3, %v243_v34, %v244_v36  ;;  %v235_v41 = vsel %vm234_vm15, %v232_v35, %v233_v37 }
 0x127   : > { %v918_v42 = vld [vmem:[#allocation2 + $0x30] sm:$0xff]  ;;  %v1840_v43 = vld [vmem:[#allocation2 + $0x38] sm:$0xff]  ;;  %v920_v44 = vld [vmem:[#allocation2 + $0x40] sm:$0xff]  ;;  %249 = vst.msk [vmem:[#allocation2 + $0x19] ss:$8 sm:$0x7] %vm1557_vm1, %v246_v39  ;;  %v191_v46 = vsel %vm190_vm11, %v188_v38, %v189_v45 }
 0x128   : > { %974 = vmatpush.msra.mxu0 %v918_v42  ;;  %1245 = vmatpush.msra.mxu3 %v918_v42  ;;  %238 = vst.msk [vmem:[#allocation2 + $0x18] ss:$8 sm:$0x7] %vm1557_vm1, %v235_v41  ;;  %vm2016_vm11 = vmmov %vm2008_vm13 }
 0x129   : > { %1255 = vmatpush.msra.mxu1 %v1840_v43  ;;  %1044 = vmatpush.msra.mxu2 %v920_v44  ;;  %194 = vst.msk [vmem:[#allocation2 + $0x4] ss:$8 sm:$0x7] %vm1557_vm1, %v191_v46 }
 0x12b   : > { %v276_v48 = vpop.permute.xlu1 %275  ;;  %v265_v49 = vpop.permute.xlu0 %264 }
 0x12c   : > { %v277_v51 = vrot.slane %v276_v48, 1  ;;  %v266_v52 = vrot.slane %v265_v49, 1  ;;  %v221_v53 = vpop.permute.xlu2 %220 }
 0x12d   : > { %v222_v57 = vrot.slane %v221_v53, 1 }
 0x12e   : > { %v279_v54 = vsel %vm2012_vm4, %v276_v48, %v277_v51  ;;  %v268_v56 = vsel %vm267_vm12, %v265_v49, %v266_v52  ;;  %vm942_vm12 = vcmask 654336  }
 0x12f   : > { %282 = vst.msk [vmem:[#allocation2 + $0x1c] ss:$8 sm:$0x7] %vm1557_vm1, %v279_v54  ;;  %v224_v58 = vsel %vm223_vm6, %v221_v53, %v222_v57  ;;  %vm2015_vm6 = vmmov %vm2006_vm0 }
 0x130   : > { %271 = vst.msk [vmem:[#allocation2 + $0x1b] ss:$8 sm:$0x7] %vm1557_vm1, %v268_v56 }
 0x131   : > { %227 = vst.msk [vmem:[#allocation2 + $0x7] ss:$8 sm:$0x7] %vm1557_vm1, %v224_v58 }
 0x133   : > { %v309_v60 = vpop.permute.xlu1 %308  ;;  %v298_v61 = vpop.permute.xlu0 %297 }
 0x134   : > { %v310_v62 = vrot.slane %v309_v60, 1  ;;  %v299_v63 = vrot.slane %v298_v61, 1 }
 0x136   : > { %v312_v0 = vsel %vm2013_vm5, %v309_v60, %v310_v62  ;;  %v301_v1 = vsel %vm2014_vm9, %v298_v61, %v299_v63 }
 0x137   : > { %315 = vst.msk [vmem:[#allocation2 + $0x1f] ss:$8 sm:$0x7] %vm1557_vm1, %v312_v0 }
 0x138   : > { %304 = vst.msk [vmem:[#allocation2 + $0x1e] ss:$8 sm:$0x7] %vm1557_vm1, %v301_v1 }
 0x13b   : > { %v177_v2 = vpop.permute.xlu1 %176  ;;  %v166_v3 = vpop.permute.xlu0 %165 }
 0x13c   : > { %v178_v4 = vrot.slane %v177_v2, 1  ;;  %v167_v5 = vrot.slane %v166_v3, 1 }
 0x13e   : > { %v180_v6 = vsel %vm2015_vm6, %v177_v2, %v178_v4  ;;  %v169_v7 = vsel %vm168_vm7, %v166_v3, %v167_v5  ;;  %vm2017_vm7 = vcmask 883712  }
 0x13f   : > { %183 = vst.msk [vmem:[#allocation2 + $0x3] ss:$8 sm:$0x7] %vm1557_vm1, %v180_v6  ;;  %v915_v8 = vld [vmem:[#allocation2 + $0x18] sm:$0xff]  ;;  %v916_v9 = vld [vmem:[#allocation2 + $0x20] sm:$0xff]  ;;  %v917_v10 = vld [vmem:[#allocation2 + $0x28] sm:$0xff] }
 0x140   : > { %172 = vst.msk [vmem:[#allocation2 + $0x2] ss:$8 sm:$0x7] %vm1557_vm1, %v169_v7  ;;  %975 = vmatpush.msra.mxu0 %v915_v8  ;;  %1246 = vmatpush.msra.mxu3 %v915_v8 }
 0x141   : > { %1256 = vmatpush.msra.mxu1 %v916_v9  ;;  %1045 = vmatpush.msra.mxu2 %v917_v10 }
 0x143   : > { %v210_v11 = vpop.permute.xlu1 %209  ;;  %v199_v12 = vpop.permute.xlu0 %198 }
 0x144   : > { %v211_v13 = vrot.slane %v210_v11, 1  ;;  %v200_v14 = vrot.slane %v199_v12, 1 }
 0x146   : > { %v213_v15 = vsel %vm2016_vm11, %v210_v11, %v211_v13  ;;  %v202_v16 = vsel %vm2017_vm7, %v199_v12, %v200_v14 }
 0x147   : > { %216 = vst.msk [vmem:[#allocation2 + $0x6] ss:$8 sm:$0x7] %vm1557_vm1, %v213_v15 }
 0x148   : > { %205 = vst.msk [vmem:[#allocation2 + $0x5] ss:$8 sm:$0x7] %vm1557_vm1, %v202_v16 }
 0x14f   : > { %v912_v19 = vld [vmem:[#allocation2] sm:$0xff]  ;;  %v913_v20 = vld [vmem:[#allocation2 + $0x8] sm:$0xff]  ;;  %v914_v21 = vld [vmem:[#allocation2 + $0x10] sm:$0xff] }
 0x150   : > { %976 = vmatpush.msra.mxu0 %v912_v19  ;;  %1247 = vmatpush.msra.mxu3 %v912_v19 }
 0x151   : > { %1257 = vmatpush.msra.mxu1 %v913_v20  ;;  %1046 = vmatpush.msra.mxu2 %v914_v21 }
 0x152   : > { %1217 = vmatmul.msk.f32.vlgmr.msra.gmra.mxu3 %vm942_vm12, %v907_v18  ;;  %1002 = vmatpush.msrb.mxu0 %v1620_v26  ;;  %v909_v26 = vld [vmem:[%s1961_s1 + $0x18] sm:$0xff] }
 0x153   : > { %1223 = vmatmul.msk.f32.vlgmr.msra.gmra.mxu1 %vm942_vm12, %v907_v18  ;;  %1228 = vmatmul.msk.f32.vlgmr.msra.gmra.mxu2 %vm942_vm12, %v906_v22 }
 0x154   : > { %1003 = vmatpush.msrb.mxu0 %v1655_v55  ;;  %v910_v55 = vld [vmem:[%s1961_s1 + $0x20] sm:$0xff] }
 0x155   : > { %1216 = vmatmul.msk.f32.vlgmr.msra.gmra.mxu0 %vm942_vm12, %v906_v22 }
 0x156   : > { %1004 = vmatpush.msrb.mxu0 %v1704_v31  ;;  %v911_v31 = vld [vmem:[%s1961_s1 + $0x28] sm:$0xff] }
 0x158   : > { %1005 = vmatpush.msrb.mxu0 %v1737_v59 }
 0x15a   : > { %1218 = vmatmul.msk.f32.gmra.mxu3 %vm942_vm12, %v908_v40  ;;  %1006 = vmatpush.msrb.mxu0 %v1765_v24 }
 0x15b   : > { %1224 = vmatmul.msk.f32.gmra.mxu1 %vm942_vm12, %v908_v40  ;;  %1229 = vmatmul.msk.f32.gmra.mxu2 %vm942_vm12, %v907_v18 }
 0x15c   : > { %1007 = vmatpush.msrb.mxu0 %v1791_v50 }
 0x15e   : > { %1008 = vmatpush.msrb.mxu0 %v1819_v17 }
 0x160   : > { %1009 = vmatpush.msrb.mxu0 %v1840_v43 }
 0x162   : > { %1219 = vmatmul.msk.f32.gmra.mxu3 %vm942_vm12, %v909_v26  ;;  %1010 = vmatpush.msrb.mxu0 %v916_v9 }
 0x163   : > { %1225 = vmatmul.msk.f32.gmra.mxu1 %vm942_vm12, %v909_v26  ;;  %1230 = vmatmul.msk.f32.gmra.mxu2 %vm942_vm12, %v908_v40 }
 0x164   : > { %1011 = vmatpush.msrb.mxu0 %v913_v20 }
 0x165   : > { %1222 = vmatmul.msk.f32.vlgmr.msrb.gmra.mxu0 %vm942_vm12, %v906_v22 }
 0x16a   : > { %1220 = vmatmul.msk.f32.gmra.mxu3 %vm942_vm12, %v910_v55 }
 0x16b   : > { %1226 = vmatmul.msk.f32.gmra.mxu1 %vm942_vm12, %v910_v55  ;;  %1231 = vmatmul.msk.f32.gmra.mxu2 %vm942_vm12, %v909_v26 }
 0x172   : > { %1221 = vmatmul.msk.f32.gmra.mxu3 %vm942_vm12, %v911_v31 }
 0x173   : > { %1227 = vmatmul.msk.f32.gmra.mxu1 %vm942_vm12, %v911_v31  ;;  %1232 = vmatmul.msk.f32.gmra.mxu2 %vm942_vm12, %v910_v55 }
 0x17b   : > { %1233 = vmatmul.msk.f32.gmra.mxu2 %vm942_vm12, %v911_v31 }
 0x1d0   : > { %v1016_v59 = vpop.f32.mrf.mxu1 }
 0x1d2   : > { %v978_v27 = vpop.f32.mrf.mxu0 }
 0x1d5   : > { %v981_v24 = vpop.f32.mrf.mxu3 }
 0x1d6   : > { %v1048_v50 = vpop.f32.mrf.mxu2 }
 0x1d8   : > { %v1019_v17 = vpop.f32.mrf.mxu1 }
 0x1dd   : > { %v984_v23 = vpop.f32.mrf.mxu3 }
 0x1de   : > { %v1051_v25 = vpop.f32.mrf.mxu2 }
 0x1e0   : > { %v1022_v28 = vpop.f32.mrf.mxu1 }
 0x1e2   : > { %v1013_v33 = vpop.f32.mrf.mxu0 }
 0x1e3   : > { %v1067_v34 = vmul.f32 %v1022_v28, %v1013_v33 }
 0x1e5   : > { %v987_v29 = vpop.f32.mrf.mxu3 }
 0x1e6   : > { %v1054_v30 = vpop.f32.mrf.mxu2  ;;  %v1066_v42 = vmul.f32 %v987_v29, %v978_v27 }
 0x1e8   : > { %v1025_v32 = vpop.f32.mrf.mxu1 }
 0x1e9   : > { %v1070_v35 = vmul.f32 %v1025_v32, %v1016_v59 }
 0x1eb   : > { %v1076_v39 = vadd.f32 %v1070_v35, %v1067_v34 }
 0x1ed   : > { %v990_v36 = vpop.f32.mrf.mxu3 }
 0x1ee   : > { %v1057_v37 = vpop.f32.mrf.mxu2  ;;  %v1069_v43 = vmul.f32 %v990_v36, %v981_v24 }
 0x1ef   : > { %v1068_v52 = vmul.f32 %v1057_v37, %v1048_v50 }
 0x1f0   : > { %v1028_v38 = vpop.f32.mrf.mxu1  ;;  %v1075_v46 = vadd.f32 %v1069_v43, %v1066_v42 }
 0x1f1   : > { %v1073_v41 = vmul.f32 %v1028_v38, %v1019_v17 }
 0x1f3   : > { %v1079_v44 = vadd.f32 %v1076_v39, %v1073_v41 }
 0x1f5   : > { %1082 = vst [vmem:[%s136_s3 + $0x8] sm:$0xff] %v1079_v44  ;;  %v993_v45 = vpop.f32.mrf.mxu3 }
 0x1f6   : > { %v1072_v47 = vmul.f32 %v993_v45, %v984_v23  ;;  %v1060_v48 = vpop.f32.mrf.mxu2 }
 0x1f7   : > { %v1071_v51 = vmul.f32 %v1060_v48, %v1051_v25 }
 0x1f8   : > { %v1078_v49 = vadd.f32 %v1075_v46, %v1072_v47 }
 0x1f9   : > { %v1077_v54 = vadd.f32 %v1071_v51, %v1068_v52 }
 0x1fa   : > { %1081 = vst [vmem:[%s136_s3] sm:$0xff] %v1078_v49 }
 0x1fe   : > { %v1063_v53 = vpop.f32.mrf.mxu2 }
 0x1ff   : > { %v1074_v56 = vmul.f32 %v1063_v53, %v1054_v30 }
 0x201   : > { %v1080_v57 = vadd.f32 %v1077_v54, %v1074_v56 }
 0x203   : > { %1083 = vst [vmem:[%s136_s3 + $0x10] sm:$0xff] %v1080_v57 }
 0x204   : > { %1351 = shalt.err (!%p1348_p3)
}
 0x205   : > { %1260 = dma.vmem_to_hbm [thread:$0]  (%p1466_p5), %s1099_s25, 384, %s1101_s26, %s1085_s13  }
 0x206 PF: > { %p1266_p4 = scmp.ge.s32.totalorder %s1386_s12, 2  ;;  %s1112_s21 = sand.u32 1, %s1374_s9  }
 0x207   : > { %s1113_s22 = scalar_lea.sflag [#allocation4], %s1112_s21 }
 0x208   : > { %p1263_p7 = pnand %p1266_p4, %p1470_p6 }
 0x20a   : > { %p1264_p8 = pneg %p1263_p7 }
 0x20c   : > { %1369 = dma.done.wait (%p1264_p8), %s1113_s22, 384  }
 0x20d   : > { %1371 = vsyncadd (%p1264_p8), %s1113_s22, 4294966912  ;;  %p12_p9 = scmp.ge.s32.totalorder %s1453_s15, 4   ;;  %s2018_s9 = smov %s1378_s10 }
 0x20e   : > { %s2019_s10 = smov %s1382_s11  ;;  %s2020_s11 = smov %s1464_s18 }
 0x20f   : > { %s2021_s12 = smov %s1453_s15  ;;  %14 = sbr.rel (!%p12_p9) target bundleno = 3 (0x3), region = 139 }
 0x214   :  { %1119 = vsyncpa [#allocation4], 1 }
 0x215   :  { %1121 = vsyncpa [#allocation4 + $0x1], 1 }

</bundles_post_ra>
